<compile_context>
chip_gen: v6e
topology: v6e:2x2x1
jax: 0.10.0
libtpu: 0.0.40
codegen_flags: <defaults>
</compile_context>

<pallas_src>
import functools

import jax
import jax.numpy as jnp
import numpy as np
from jax.experimental import pallas as pl
from jax.experimental.pallas import tpu as pltpu

# ----------------------------- small config ---------------------------------
NUM_CAT_FEATURES = 3
LIST_UNIC_CAT = [5, 7, 4]
NUM_NUMERICAL = 6
NUM_TS_FEATURES = 4
HIDDEN = 32
EMB_DIM = 4
OUTPUT_SIZE = 6
BATCH = 2
SEQ = 8

SEG = 128            # lane-aligned stride for the packed bias array
N_BIAS_SEGS = 10

VMEM_SPEC = pl.BlockSpec(memory_space=pltpu.MemorySpace.VMEM)


# --------------------------- fused forward kernel ----------------------------
def fused_kernel(x_tab_ref, ts_ref, w_ih_ref, w_hh_ref, wt1_ref, wt2_ref,
                 wfc_ref, wcomb1_ref, wc2_ref, wc3_ref, wk2_ref, bias_ref,
                 out_ref):
    relu = lambda v: jnp.maximum(v, 0.0)
    dot = lambda a, b: jnp.dot(a, b, preferred_element_type=jnp.float32)

    B, T, F = ts_ref.shape
    H = HIDDEN

    # ---- packed biases (each segment starts on a 128-lane boundary) ----
    b_lstm = bias_ref[:, 0 * SEG:0 * SEG + 4 * H]              # (1,128)
    bt1    = bias_ref[:, 1 * SEG:1 * SEG + 128]
    bt2    = bias_ref[:, 2 * SEG:2 * SEG + 64]
    bfc    = bias_ref[:, 3 * SEG:3 * SEG + 64]
    bcomb1 = bias_ref[:, 4 * SEG:4 * SEG + 128]                # [bc1 | bk1]
    bc2    = bias_ref[:, 5 * SEG:5 * SEG + 32]
    bc3    = bias_ref[:, 6 * SEG:6 * SEG + OUTPUT_SIZE]
    bk2    = bias_ref[:, 7 * SEG:7 * SEG + 6 * OUTPUT_SIZE]
    att_w  = bias_ref[:, 8 * SEG:8 * SEG + H]                  # (1,H)
    att_b  = bias_ref[:, 9 * SEG:9 * SEG + 1]                  # (1,1)

    # ---- tabular branch: Linear(18,128)+ReLU -> Linear(128,64)+ReLU ----
    h_tab = relu(dot(x_tab_ref[...], wt1_ref[...]) + bt1)      # (B,128)
    x1 = relu(dot(h_tab, wt2_ref[...]) + bt2)                  # (B,64)

    # ---- LSTM: input projection hoisted out of the recurrence ----
    xw = dot(ts_ref[...].reshape(B * T, F), w_ih_ref[...]) + b_lstm   # (B*T,4H)
    xw = xw.reshape(B, T, 4 * H)

    w_hh = w_hh_ref[...]
    h = jnp.zeros((B, H), jnp.float32)
    c = jnp.zeros((B, H), jnp.float32)
    hs = []
    for t in range(T):                                         # fully unrolled (T static)
        gates = xw[:, t, :] + dot(h, w_hh)                     # (B,4H), PyTorch order i,f,g,o
        sig = jax.nn.sigmoid(gates)                            # one EUP pass for i,f,o
        tnh = jnp.tanh(gates)                                  # one EUP pass for g
        i_g = sig[:, 0 * H:1 * H]
        f_g = sig[:, 1 * H:2 * H]
        g_g = tnh[:, 2 * H:3 * H]
        o_g = sig[:, 3 * H:4 * H]
        c = f_g * c + i_g * g_g
        h = o_g * jnp.tanh(c)
        hs.append(h)

    # ---- attention: vectorized, off the serial chain ----
    h_all = jnp.stack(hs, axis=1)                              # (B,T,H)
    scores = jnp.sum(h_all * att_w.reshape(1, 1, H), axis=-1) + att_b   # (B,T)
    m = jnp.max(scores, axis=-1, keepdims=True)
    p = jnp.exp(scores - m)
    attn = p / jnp.sum(p, axis=-1, keepdims=True)              # softmax over time (lanes)
    ctx = jnp.sum(attn[:, :, None] * h_all, axis=1)            # (B,H)

    # dropout = identity (eval); fc_after_context + ReLU
    x2 = relu(dot(ctx, wfc_ref[...]) + bfc)                    # (B,64)

    # ---- heads: one concat, one (128,128) matmul feeds both heads ----
    xcat = jnp.concatenate([x1, x2], axis=1)                   # (B,128)
    hboth = relu(dot(xcat, wcomb1_ref[...]) + bcomb1)          # (B,128)
    hc = hboth[:, :64]                                         # combined-head hidden
    hk = hboth[:, 64:]                                         # categorical-head hidden
    hc2 = relu(dot(hc, wc2_ref[...]) + bc2)                    # (B,32)
    out = dot(hc2, wc3_ref[...]) + bc3                         # (B,6)
    out_cls = dot(hk, wk2_ref[...]) + bk2                      # (B,36)

    out_ref[...] = jnp.concatenate([out, out_cls], axis=1)     # (B,42)


# ------------------------------ model wrapper --------------------------------
def hybrid_model_forward(packed, categorical_data, numerical_data, time_series_data):
    numerical_data = numerical_data.astype(jnp.float32)
    time_series_data = time_series_data.astype(jnp.float32)

    # embedding gather + tabular concat: tiny data-dependent gather, JAX glue.
    embs = [tbl[categorical_data[:, i]] for i, tbl in enumerate(packed["emb_tables"])]
    x_tab = jnp.concatenate(embs + [numerical_data], axis=1)   # (B,18)

    B = x_tab.shape[0]
    flat = pl.pallas_call(
        fused_kernel,
        out_shape=jax.ShapeDtypeStruct((B, 7 * OUTPUT_SIZE), jnp.float32),
        in_specs=[VMEM_SPEC] * 12,
        out_specs=VMEM_SPEC,
    )(x_tab, time_series_data, packed["w_ih"], packed["w_hh"], packed["wt1"],
      packed["wt2"], packed["wfc"], packed["wcomb1"], packed["wc2"],
      packed["wc3"], packed["wk2"], packed["biases"])

    output = flat[:, :OUTPUT_SIZE]
    output_class = flat[:, OUTPUT_SIZE:].reshape(-1, 6, OUTPUT_SIZE)
    return output, output_class


# ----------------------- parameter packing (done once) -----------------------
def pack_params(params):
    """Prepack biases/attention into one lane-aligned array and wc1|wk1 into
    one (128,128) weight. Runs once, outside the jitted forward."""
    biases = np.zeros((1, N_BIAS_SEGS * SEG), np.float32)

    def put(i, v):
        v = np.asarray(v, dtype=np.float32).reshape(1, -1)
        biases[:, i * SEG:i * SEG + v.shape[1]] = v

    put(0, params["b_lstm"])
    put(1, params["bt1"])
    put(2, params["bt2"])
    put(3, params["bfc"])
    put(4, np.concatenate([np.asarray(params["bc1"]), np.asarray(params["bk1"])], axis=1))
    put(5, params["bc2"])
    put(6, params["bc3"])
    put(7, params["bk2"])
    put(8, params["att_w"])
    put(9, params["att_b"])

    wc1 = jnp.concatenate([params["wc1a"], params["wc1b"]], axis=0)   # (128,64)
    wk1 = jnp.concatenate([params["wk1a"], params["wk1b"]], axis=0)   # (128,64)
    wcomb1 = jnp.concatenate([wc1, wk1], axis=1)                      # (128,128)

    return dict(
        emb_tables=params["emb_tables"],
        w_ih=params["w_ih"], w_hh=params["w_hh"],
        wt1=params["wt1"], wt2=params["wt2"], wfc=params["wfc"],
        wcomb1=wcomb1, wc2=params["wc2"], wc3=params["wc3"], wk2=params["wk2"],
        biases=jnp.asarray(biases),
    )


# ------------------------------ pure-JAX reference ---------------------------
def reference_forward(params, cat, num, ts):
    num = num.astype(jnp.float32)
    ts = ts.astype(jnp.float32)
    embs = [tbl[cat[:, i]] for i, tbl in enumerate(params["emb_tables"])]
    x_tab = jnp.concatenate(embs + [num], axis=1)
    h1 = jax.nn.relu(x_tab @ params["wt1"] + params["bt1"])
    x1 = jax.nn.relu(h1 @ params["wt2"] + params["bt2"])

    H = HIDDEN
    B = ts.shape[0]

    def step(carry, x_t):
        h, c = carry
        gates = x_t @ params["w_ih"] + h @ params["w_hh"] + params["b_lstm"][0]
        i = jax.nn.sigmoid(gates[:, :H])
        f = jax.nn.sigmoid(gates[:, H:2 * H])
        g = jnp.tanh(gates[:, 2 * H:3 * H])
        o = jax.nn.sigmoid(gates[:, 3 * H:])
        c = f * c + i * g
        h = o * jnp.tanh(c)
        return (h, c), h

    (_, _), outs = jax.lax.scan(step, (jnp.zeros((B, H)), jnp.zeros((B, H))),
                                jnp.transpose(ts, (1, 0, 2)))
    lstm_out = jnp.transpose(outs, (1, 0, 2))                            # (B,T,H)
    scores = lstm_out @ params["att_w"].T + params["att_b"]              # (B,T,1)
    attn = jax.nn.softmax(scores, axis=1)
    ctx = jnp.sum(attn * lstm_out, axis=1)                               # (B,H)
    x2 = jax.nn.relu(ctx @ params["wfc"] + params["bfc"])

    x = jnp.concatenate([x1, x2], axis=1)
    wc1 = jnp.concatenate([params["wc1a"], params["wc1b"]], axis=0)
    wk1 = jnp.concatenate([params["wk1a"], params["wk1b"]], axis=0)
    hc = jax.nn.relu(x @ wc1 + params["bc1"])
    hc = jax.nn.relu(hc @ params["wc2"] + params["bc2"])
    output = hc @ params["wc3"] + params["bc3"]
    hk = jax.nn.relu(x @ wk1 + params["bk1"])
    output_class = (hk @ params["wk2"] + params["bk2"]).reshape(-1, 6, OUTPUT_SIZE)
    return output, output_class


# ------------------------------ deterministic init ---------------------------
def init_params(key):
    keys = iter(jax.random.split(key, 32))

    def w(shape, scale=0.1):
        return (scale * jax.random.normal(next(keys), shape)).astype(jnp.float32)

    tab_in = NUM_CAT_FEATURES * EMB_DIM + NUM_NUMERICAL
    return dict(
        emb_tables=[w((n, EMB_DIM)) for n in LIST_UNIC_CAT],
        wt1=w((tab_in, 128)), bt1=w((1, 128)),
        wt2=w((128, 64)), bt2=w((1, 64)),
        w_ih=w((NUM_TS_FEATURES, 4 * HIDDEN)),
        w_hh=w((HIDDEN, 4 * HIDDEN)),
        b_lstm=w((1, 4 * HIDDEN)),            # b_ih + b_hh folded into one bias
        att_w=w((1, HIDDEN)), att_b=w((1, 1)),
        wfc=w((HIDDEN, 64)), bfc=w((1, 64)),
        wc1a=w((64, 64)), wc1b=w((64, 64)), bc1=w((1, 64)),
        wc2=w((64, 32)), bc2=w((1, 32)),
        wc3=w((32, OUTPUT_SIZE)), bc3=w((1, OUTPUT_SIZE)),
        wk1a=w((64, 64)), wk1b=w((64, 64)), bk1=w((1, 64)),
        wk2=w((64, 6 * OUTPUT_SIZE)), bk2=w((1, 6 * OUTPUT_SIZE)),
    )


# ----------------------------------- main ------------------------------------
if __name__ == "__main__":
    key = jax.random.PRNGKey(0)
    pkey, dkey = jax.random.split(key)
    params = init_params(pkey)
    packed = pack_params(params)

    k_cat, k_num, k_ts = jax.random.split(dkey, 3)
    cat_keys = jax.random.split(k_cat, NUM_CAT_FEATURES)
    categorical_data = jnp.stack(
        [jax.random.randint(cat_keys[i], (BATCH,), 0, n)
         for i, n in enumerate(LIST_UNIC_CAT)], axis=1)                  # (B,3) int32
    numerical_data = jax.random.normal(k_num, (BATCH, NUM_NUMERICAL), dtype=jnp.float32)
    time_series_data = jax.random.normal(k_ts, (BATCH, SEQ, NUM_TS_FEATURES),
                                         dtype=jnp.float32)

    fwd = jax.jit(functools.partial(hybrid_model_forward, packed))
    output, output_class = jax.block_until_ready(
        fwd(categorical_data, numerical_data, time_series_data))

    assert output.shape == (BATCH, OUTPUT_SIZE)
    assert output_class.shape == (BATCH, 6, OUTPUT_SIZE)

    ref_out, ref_cls = reference_forward(params, categorical_data,
                                         numerical_data, time_series_data)
    np.testing.assert_allclose(np.asarray(output), np.asarray(ref_out),
                               rtol=2e-2, atol=2e-2)
    np.testing.assert_allclose(np.asarray(output_class), np.asarray(ref_cls),
                               rtol=2e-2, atol=2e-2)

    print("KERNEL_OK")
</pallas_src>

<mosaic_0001>
module attributes {stable_mosaic.version = 11 : i64} {
  func.func @fused_kernel(%arg0: memref<2x18xf32, #tpu.memory_space<vmem>>, %arg1: memref<2x8x4xf32, #tpu.memory_space<vmem>>, %arg2: memref<4x128xf32, #tpu.memory_space<vmem>>, %arg3: memref<32x128xf32, #tpu.memory_space<vmem>>, %arg4: memref<18x128xf32, #tpu.memory_space<vmem>>, %arg5: memref<128x64xf32, #tpu.memory_space<vmem>>, %arg6: memref<32x64xf32, #tpu.memory_space<vmem>>, %arg7: memref<128x128xf32, #tpu.memory_space<vmem>>, %arg8: memref<64x32xf32, #tpu.memory_space<vmem>>, %arg9: memref<32x6xf32, #tpu.memory_space<vmem>>, %arg10: memref<64x36xf32, #tpu.memory_space<vmem>>, %arg11: memref<1x1280xf32, #tpu.memory_space<vmem>>, %arg12: memref<2x42xf32, #tpu.memory_space<vmem>>) attributes {dimension_semantics = [], scalar_prefetch = 0 : i64, scratch_operands = 0 : i64, tpu.core_type = #tpu.core_type<tc>} {
    %c0 = arith.constant 0 : index
    %c0_0 = arith.constant 0 : index
    %0 = vector.load %arg11[%c0, %c0_0] : memref<1x1280xf32, #tpu.memory_space<vmem>>, vector<1x128xf32>
    %c0_1 = arith.constant 0 : index
    %c128 = arith.constant 128 : index
    %1 = vector.load %arg11[%c0_1, %c128] : memref<1x1280xf32, #tpu.memory_space<vmem>>, vector<1x128xf32>
    %c0_2 = arith.constant 0 : index
    %c256 = arith.constant 256 : index
    %2 = vector.load %arg11[%c0_2, %c256] : memref<1x1280xf32, #tpu.memory_space<vmem>>, vector<1x64xf32>
    %c0_3 = arith.constant 0 : index
    %c384 = arith.constant 384 : index
    %3 = vector.load %arg11[%c0_3, %c384] : memref<1x1280xf32, #tpu.memory_space<vmem>>, vector<1x64xf32>
    %c0_4 = arith.constant 0 : index
    %c512 = arith.constant 512 : index
    %4 = vector.load %arg11[%c0_4, %c512] : memref<1x1280xf32, #tpu.memory_space<vmem>>, vector<1x128xf32>
    %c0_5 = arith.constant 0 : index
    %c640 = arith.constant 640 : index
    %5 = vector.load %arg11[%c0_5, %c640] : memref<1x1280xf32, #tpu.memory_space<vmem>>, vector<1x32xf32>
    %c0_6 = arith.constant 0 : index
    %c768 = arith.constant 768 : index
    %6 = vector.load %arg11[%c0_6, %c768] : memref<1x1280xf32, #tpu.memory_space<vmem>>, vector<1x6xf32>
    %c0_7 = arith.constant 0 : index
    %c896 = arith.constant 896 : index
    %7 = vector.load %arg11[%c0_7, %c896] : memref<1x1280xf32, #tpu.memory_space<vmem>>, vector<1x36xf32>
    %c0_8 = arith.constant 0 : index
    %c1024 = arith.constant 1024 : index
    %8 = vector.load %arg11[%c0_8, %c1024] : memref<1x1280xf32, #tpu.memory_space<vmem>>, vector<1x32xf32>
    %c0_9 = arith.constant 0 : index
    %c1152 = arith.constant 1152 : index
    %9 = vector.load %arg11[%c0_9, %c1152] : memref<1x1280xf32, #tpu.memory_space<vmem>>, vector<1x1xf32>
    %c0_10 = arith.constant 0 : index
    %c0_11 = arith.constant 0 : index
    %10 = vector.load %arg0[%c0_10, %c0_11] : memref<2x18xf32, #tpu.memory_space<vmem>>, vector<2x18xf32>
    %c0_12 = arith.constant 0 : index
    %c0_13 = arith.constant 0 : index
    %11 = vector.load %arg4[%c0_12, %c0_13] : memref<18x128xf32, #tpu.memory_space<vmem>>, vector<18x128xf32>
    %cst = arith.constant dense<0.000000e+00> : vector<2x128xf32>
    %12 = tpu.matmul %10, %11, %cst {dimension_numbers = #tpu.dot_dimension_numbers<[1], [0], [0], [1], [0, 0, 1, 1], [], []>} : vector<2x18xf32>, vector<18x128xf32>, vector<2x128xf32> -> vector<2x128xf32>
    %13 = vector.broadcast %1 : vector<1x128xf32> to vector<2x128xf32>
    %14 = arith.addf %12, %13 : vector<2x128xf32>
    %cst_14 = arith.constant 0.000000e+00 : f32
    %15 = vector.broadcast %cst_14 : f32 to vector<2x128xf32>
    %16 = arith.maximumf %14, %15 : vector<2x128xf32>
    %c0_15 = arith.constant 0 : index
    %c0_16 = arith.constant 0 : index
    %17 = vector.load %arg5[%c0_15, %c0_16] : memref<128x64xf32, #tpu.memory_space<vmem>>, vector<128x64xf32>
    %cst_17 = arith.constant dense<0.000000e+00> : vector<2x64xf32>
    %18 = tpu.matmul %16, %17, %cst_17 {dimension_numbers = #tpu.dot_dimension_numbers<[1], [0], [0], [1], [0, 0, 1, 1], [], []>} : vector<2x128xf32>, vector<128x64xf32>, vector<2x64xf32> -> vector<2x64xf32>
    %19 = vector.broadcast %2 : vector<1x64xf32> to vector<2x64xf32>
    %20 = arith.addf %18, %19 : vector<2x64xf32>
    %cst_18 = arith.constant 0.000000e+00 : f32
    %21 = vector.broadcast %cst_18 : f32 to vector<2x64xf32>
    %22 = arith.maximumf %20, %21 : vector<2x64xf32>
    %c0_19 = arith.constant 0 : index
    %c0_20 = arith.constant 0 : index
    %c0_21 = arith.constant 0 : index
    %23 = vector.load %arg1[%c0_19, %c0_20, %c0_21] : memref<2x8x4xf32, #tpu.memory_space<vmem>>, vector<2x8x4xf32>
    %24 = vector.shape_cast %23 : vector<2x8x4xf32> to vector<16x4xf32>
    %c0_22 = arith.constant 0 : index
    %c0_23 = arith.constant 0 : index
    %25 = vector.load %arg2[%c0_22, %c0_23] : memref<4x128xf32, #tpu.memory_space<vmem>>, vector<4x128xf32>
    %cst_24 = arith.constant dense<0.000000e+00> : vector<16x128xf32>
    %26 = tpu.matmul %24, %25, %cst_24 {dimension_numbers = #tpu.dot_dimension_numbers<[1], [0], [0], [1], [0, 0, 1, 1], [], []>} : vector<16x4xf32>, vector<4x128xf32>, vector<16x128xf32> -> vector<16x128xf32>
    %27 = vector.broadcast %0 : vector<1x128xf32> to vector<16x128xf32>
    %28 = arith.addf %26, %27 : vector<16x128xf32>
    %29 = vector.shape_cast %28 : vector<16x128xf32> to vector<2x8x128xf32>
    %c0_25 = arith.constant 0 : index
    %c0_26 = arith.constant 0 : index
    %30 = vector.load %arg3[%c0_25, %c0_26] : memref<32x128xf32, #tpu.memory_space<vmem>>, vector<32x128xf32>
    %cst_27 = arith.constant 0.000000e+00 : f32
    %31 = vector.broadcast %cst_27 : f32 to vector<2x32xf32>
    %cst_28 = arith.constant 0.000000e+00 : f32
    %32 = vector.broadcast %cst_28 : f32 to vector<2x32xf32>
    %33 = vector.extract_strided_slice %29 {offsets = [0, 0, 0], sizes = [2, 1, 128], strides = [1, 1, 1]} : vector<2x8x128xf32> to vector<2x1x128xf32>
    %34 = vector.shape_cast %33 : vector<2x1x128xf32> to vector<2x128xf32>
    %cst_29 = arith.constant dense<0.000000e+00> : vector<2x128xf32>
    %35 = tpu.matmul %31, %30, %cst_29 {dimension_numbers = #tpu.dot_dimension_numbers<[1], [0], [0], [1], [0, 0, 1, 1], [], []>} : vector<2x32xf32>, vector<32x128xf32>, vector<2x128xf32> -> vector<2x128xf32>
    %36 = arith.addf %34, %35 : vector<2x128xf32>
    %37 = arith.negf %36 : vector<2x128xf32>
    %38 = math.exp %37 : vector<2x128xf32>
    %cst_30 = arith.constant 1.000000e+00 : f32
    %39 = vector.broadcast %cst_30 : f32 to vector<2x128xf32>
    %40 = arith.addf %39, %38 : vector<2x128xf32>
    %41 = arith.divf %39, %40 : vector<2x128xf32>
    %42 = math.tanh %36 : vector<2x128xf32>
    %43 = vector.extract_strided_slice %41 {offsets = [0, 0], sizes = [2, 32], strides = [1, 1]} : vector<2x128xf32> to vector<2x32xf32>
    %44 = vector.extract_strided_slice %41 {offsets = [0, 32], sizes = [2, 32], strides = [1, 1]} : vector<2x128xf32> to vector<2x32xf32>
    %45 = vector.extract_strided_slice %42 {offsets = [0, 64], sizes = [2, 32], strides = [1, 1]} : vector<2x128xf32> to vector<2x32xf32>
    %46 = vector.extract_strided_slice %41 {offsets = [0, 96], sizes = [2, 32], strides = [1, 1]} : vector<2x128xf32> to vector<2x32xf32>
    %47 = arith.mulf %44, %32 : vector<2x32xf32>
    %48 = arith.mulf %43, %45 : vector<2x32xf32>
    %49 = arith.addf %47, %48 : vector<2x32xf32>
    %50 = math.tanh %49 : vector<2x32xf32>
    %51 = arith.mulf %46, %50 : vector<2x32xf32>
    %52 = vector.extract_strided_slice %29 {offsets = [0, 1, 0], sizes = [2, 1, 128], strides = [1, 1, 1]} : vector<2x8x128xf32> to vector<2x1x128xf32>
    %53 = vector.shape_cast %52 : vector<2x1x128xf32> to vector<2x128xf32>
    %cst_31 = arith.constant dense<0.000000e+00> : vector<2x128xf32>
    %54 = tpu.matmul %51, %30, %cst_31 {dimension_numbers = #tpu.dot_dimension_numbers<[1], [0], [0], [1], [0, 0, 1, 1], [], []>} : vector<2x32xf32>, vector<32x128xf32>, vector<2x128xf32> -> vector<2x128xf32>
    %55 = arith.addf %53, %54 : vector<2x128xf32>
    %56 = arith.negf %55 : vector<2x128xf32>
    %57 = math.exp %56 : vector<2x128xf32>
    %cst_32 = arith.constant 1.000000e+00 : f32
    %58 = vector.broadcast %cst_32 : f32 to vector<2x128xf32>
    %59 = arith.addf %58, %57 : vector<2x128xf32>
    %60 = arith.divf %58, %59 : vector<2x128xf32>
    %61 = math.tanh %55 : vector<2x128xf32>
    %62 = vector.extract_strided_slice %60 {offsets = [0, 0], sizes = [2, 32], strides = [1, 1]} : vector<2x128xf32> to vector<2x32xf32>
    %63 = vector.extract_strided_slice %60 {offsets = [0, 32], sizes = [2, 32], strides = [1, 1]} : vector<2x128xf32> to vector<2x32xf32>
    %64 = vector.extract_strided_slice %61 {offsets = [0, 64], sizes = [2, 32], strides = [1, 1]} : vector<2x128xf32> to vector<2x32xf32>
    %65 = vector.extract_strided_slice %60 {offsets = [0, 96], sizes = [2, 32], strides = [1, 1]} : vector<2x128xf32> to vector<2x32xf32>
    %66 = arith.mulf %63, %49 : vector<2x32xf32>
    %67 = arith.mulf %62, %64 : vector<2x32xf32>
    %68 = arith.addf %66, %67 : vector<2x32xf32>
    %69 = math.tanh %68 : vector<2x32xf32>
    %70 = arith.mulf %65, %69 : vector<2x32xf32>
    %71 = vector.extract_strided_slice %29 {offsets = [0, 2, 0], sizes = [2, 1, 128], strides = [1, 1, 1]} : vector<2x8x128xf32> to vector<2x1x128xf32>
    %72 = vector.shape_cast %71 : vector<2x1x128xf32> to vector<2x128xf32>
    %cst_33 = arith.constant dense<0.000000e+00> : vector<2x128xf32>
    %73 = tpu.matmul %70, %30, %cst_33 {dimension_numbers = #tpu.dot_dimension_numbers<[1], [0], [0], [1], [0, 0, 1, 1], [], []>} : vector<2x32xf32>, vector<32x128xf32>, vector<2x128xf32> -> vector<2x128xf32>
    %74 = arith.addf %72, %73 : vector<2x128xf32>
    %75 = arith.negf %74 : vector<2x128xf32>
    %76 = math.exp %75 : vector<2x128xf32>
    %cst_34 = arith.constant 1.000000e+00 : f32
    %77 = vector.broadcast %cst_34 : f32 to vector<2x128xf32>
    %78 = arith.addf %77, %76 : vector<2x128xf32>
    %79 = arith.divf %77, %78 : vector<2x128xf32>
    %80 = math.tanh %74 : vector<2x128xf32>
    %81 = vector.extract_strided_slice %79 {offsets = [0, 0], sizes = [2, 32], strides = [1, 1]} : vector<2x128xf32> to vector<2x32xf32>
    %82 = vector.extract_strided_slice %79 {offsets = [0, 32], sizes = [2, 32], strides = [1, 1]} : vector<2x128xf32> to vector<2x32xf32>
    %83 = vector.extract_strided_slice %80 {offsets = [0, 64], sizes = [2, 32], strides = [1, 1]} : vector<2x128xf32> to vector<2x32xf32>
    %84 = vector.extract_strided_slice %79 {offsets = [0, 96], sizes = [2, 32], strides = [1, 1]} : vector<2x128xf32> to vector<2x32xf32>
    %85 = arith.mulf %82, %68 : vector<2x32xf32>
    %86 = arith.mulf %81, %83 : vector<2x32xf32>
    %87 = arith.addf %85, %86 : vector<2x32xf32>
    %88 = math.tanh %87 : vector<2x32xf32>
    %89 = arith.mulf %84, %88 : vector<2x32xf32>
    %90 = vector.extract_strided_slice %29 {offsets = [0, 3, 0], sizes = [2, 1, 128], strides = [1, 1, 1]} : vector<2x8x128xf32> to vector<2x1x128xf32>
    %91 = vector.shape_cast %90 : vector<2x1x128xf32> to vector<2x128xf32>
    %cst_35 = arith.constant dense<0.000000e+00> : vector<2x128xf32>
    %92 = tpu.matmul %89, %30, %cst_35 {dimension_numbers = #tpu.dot_dimension_numbers<[1], [0], [0], [1], [0, 0, 1, 1], [], []>} : vector<2x32xf32>, vector<32x128xf32>, vector<2x128xf32> -> vector<2x128xf32>
    %93 = arith.addf %91, %92 : vector<2x128xf32>
    %94 = arith.negf %93 : vector<2x128xf32>
    %95 = math.exp %94 : vector<2x128xf32>
    %cst_36 = arith.constant 1.000000e+00 : f32
    %96 = vector.broadcast %cst_36 : f32 to vector<2x128xf32>
    %97 = arith.addf %96, %95 : vector<2x128xf32>
    %98 = arith.divf %96, %97 : vector<2x128xf32>
    %99 = math.tanh %93 : vector<2x128xf32>
    %100 = vector.extract_strided_slice %98 {offsets = [0, 0], sizes = [2, 32], strides = [1, 1]} : vector<2x128xf32> to vector<2x32xf32>
    %101 = vector.extract_strided_slice %98 {offsets = [0, 32], sizes = [2, 32], strides = [1, 1]} : vector<2x128xf32> to vector<2x32xf32>
    %102 = vector.extract_strided_slice %99 {offsets = [0, 64], sizes = [2, 32], strides = [1, 1]} : vector<2x128xf32> to vector<2x32xf32>
    %103 = vector.extract_strided_slice %98 {offsets = [0, 96], sizes = [2, 32], strides = [1, 1]} : vector<2x128xf32> to vector<2x32xf32>
    %104 = arith.mulf %101, %87 : vector<2x32xf32>
    %105 = arith.mulf %100, %102 : vector<2x32xf32>
    %106 = arith.addf %104, %105 : vector<2x32xf32>
    %107 = math.tanh %106 : vector<2x32xf32>
    %108 = arith.mulf %103, %107 : vector<2x32xf32>
    %109 = vector.extract_strided_slice %29 {offsets = [0, 4, 0], sizes = [2, 1, 128], strides = [1, 1, 1]} : vector<2x8x128xf32> to vector<2x1x128xf32>
    %110 = vector.shape_cast %109 : vector<2x1x128xf32> to vector<2x128xf32>
    %cst_37 = arith.constant dense<0.000000e+00> : vector<2x128xf32>
    %111 = tpu.matmul %108, %30, %cst_37 {dimension_numbers = #tpu.dot_dimension_numbers<[1], [0], [0], [1], [0, 0, 1, 1], [], []>} : vector<2x32xf32>, vector<32x128xf32>, vector<2x128xf32> -> vector<2x128xf32>
    %112 = arith.addf %110, %111 : vector<2x128xf32>
    %113 = arith.negf %112 : vector<2x128xf32>
    %114 = math.exp %113 : vector<2x128xf32>
    %cst_38 = arith.constant 1.000000e+00 : f32
    %115 = vector.broadcast %cst_38 : f32 to vector<2x128xf32>
    %116 = arith.addf %115, %114 : vector<2x128xf32>
    %117 = arith.divf %115, %116 : vector<2x128xf32>
    %118 = math.tanh %112 : vector<2x128xf32>
    %119 = vector.extract_strided_slice %117 {offsets = [0, 0], sizes = [2, 32], strides = [1, 1]} : vector<2x128xf32> to vector<2x32xf32>
    %120 = vector.extract_strided_slice %117 {offsets = [0, 32], sizes = [2, 32], strides = [1, 1]} : vector<2x128xf32> to vector<2x32xf32>
    %121 = vector.extract_strided_slice %118 {offsets = [0, 64], sizes = [2, 32], strides = [1, 1]} : vector<2x128xf32> to vector<2x32xf32>
    %122 = vector.extract_strided_slice %117 {offsets = [0, 96], sizes = [2, 32], strides = [1, 1]} : vector<2x128xf32> to vector<2x32xf32>
    %123 = arith.mulf %120, %106 : vector<2x32xf32>
    %124 = arith.mulf %119, %121 : vector<2x32xf32>
    %125 = arith.addf %123, %124 : vector<2x32xf32>
    %126 = math.tanh %125 : vector<2x32xf32>
    %127 = arith.mulf %122, %126 : vector<2x32xf32>
    %128 = vector.extract_strided_slice %29 {offsets = [0, 5, 0], sizes = [2, 1, 128], strides = [1, 1, 1]} : vector<2x8x128xf32> to vector<2x1x128xf32>
    %129 = vector.shape_cast %128 : vector<2x1x128xf32> to vector<2x128xf32>
    %cst_39 = arith.constant dense<0.000000e+00> : vector<2x128xf32>
    %130 = tpu.matmul %127, %30, %cst_39 {dimension_numbers = #tpu.dot_dimension_numbers<[1], [0], [0], [1], [0, 0, 1, 1], [], []>} : vector<2x32xf32>, vector<32x128xf32>, vector<2x128xf32> -> vector<2x128xf32>
    %131 = arith.addf %129, %130 : vector<2x128xf32>
    %132 = arith.negf %131 : vector<2x128xf32>
    %133 = math.exp %132 : vector<2x128xf32>
    %cst_40 = arith.constant 1.000000e+00 : f32
    %134 = vector.broadcast %cst_40 : f32 to vector<2x128xf32>
    %135 = arith.addf %134, %133 : vector<2x128xf32>
    %136 = arith.divf %134, %135 : vector<2x128xf32>
    %137 = math.tanh %131 : vector<2x128xf32>
    %138 = vector.extract_strided_slice %136 {offsets = [0, 0], sizes = [2, 32], strides = [1, 1]} : vector<2x128xf32> to vector<2x32xf32>
    %139 = vector.extract_strided_slice %136 {offsets = [0, 32], sizes = [2, 32], strides = [1, 1]} : vector<2x128xf32> to vector<2x32xf32>
    %140 = vector.extract_strided_slice %137 {offsets = [0, 64], sizes = [2, 32], strides = [1, 1]} : vector<2x128xf32> to vector<2x32xf32>
    %141 = vector.extract_strided_slice %136 {offsets = [0, 96], sizes = [2, 32], strides = [1, 1]} : vector<2x128xf32> to vector<2x32xf32>
    %142 = arith.mulf %139, %125 : vector<2x32xf32>
    %143 = arith.mulf %138, %140 : vector<2x32xf32>
    %144 = arith.addf %142, %143 : vector<2x32xf32>
    %145 = math.tanh %144 : vector<2x32xf32>
    %146 = arith.mulf %141, %145 : vector<2x32xf32>
    %147 = vector.extract_strided_slice %29 {offsets = [0, 6, 0], sizes = [2, 1, 128], strides = [1, 1, 1]} : vector<2x8x128xf32> to vector<2x1x128xf32>
    %148 = vector.shape_cast %147 : vector<2x1x128xf32> to vector<2x128xf32>
    %cst_41 = arith.constant dense<0.000000e+00> : vector<2x128xf32>
    %149 = tpu.matmul %146, %30, %cst_41 {dimension_numbers = #tpu.dot_dimension_numbers<[1], [0], [0], [1], [0, 0, 1, 1], [], []>} : vector<2x32xf32>, vector<32x128xf32>, vector<2x128xf32> -> vector<2x128xf32>
    %150 = arith.addf %148, %149 : vector<2x128xf32>
    %151 = arith.negf %150 : vector<2x128xf32>
    %152 = math.exp %151 : vector<2x128xf32>
    %cst_42 = arith.constant 1.000000e+00 : f32
    %153 = vector.broadcast %cst_42 : f32 to vector<2x128xf32>
    %154 = arith.addf %153, %152 : vector<2x128xf32>
    %155 = arith.divf %153, %154 : vector<2x128xf32>
    %156 = math.tanh %150 : vector<2x128xf32>
    %157 = vector.extract_strided_slice %155 {offsets = [0, 0], sizes = [2, 32], strides = [1, 1]} : vector<2x128xf32> to vector<2x32xf32>
    %158 = vector.extract_strided_slice %155 {offsets = [0, 32], sizes = [2, 32], strides = [1, 1]} : vector<2x128xf32> to vector<2x32xf32>
    %159 = vector.extract_strided_slice %156 {offsets = [0, 64], sizes = [2, 32], strides = [1, 1]} : vector<2x128xf32> to vector<2x32xf32>
    %160 = vector.extract_strided_slice %155 {offsets = [0, 96], sizes = [2, 32], strides = [1, 1]} : vector<2x128xf32> to vector<2x32xf32>
    %161 = arith.mulf %158, %144 : vector<2x32xf32>
    %162 = arith.mulf %157, %159 : vector<2x32xf32>
    %163 = arith.addf %161, %162 : vector<2x32xf32>
    %164 = math.tanh %163 : vector<2x32xf32>
    %165 = arith.mulf %160, %164 : vector<2x32xf32>
    %166 = vector.extract_strided_slice %29 {offsets = [0, 7, 0], sizes = [2, 1, 128], strides = [1, 1, 1]} : vector<2x8x128xf32> to vector<2x1x128xf32>
    %167 = vector.shape_cast %166 : vector<2x1x128xf32> to vector<2x128xf32>
    %cst_43 = arith.constant dense<0.000000e+00> : vector<2x128xf32>
    %168 = tpu.matmul %165, %30, %cst_43 {dimension_numbers = #tpu.dot_dimension_numbers<[1], [0], [0], [1], [0, 0, 1, 1], [], []>} : vector<2x32xf32>, vector<32x128xf32>, vector<2x128xf32> -> vector<2x128xf32>
    %169 = arith.addf %167, %168 : vector<2x128xf32>
    %170 = arith.negf %169 : vector<2x128xf32>
    %171 = math.exp %170 : vector<2x128xf32>
    %cst_44 = arith.constant 1.000000e+00 : f32
    %172 = vector.broadcast %cst_44 : f32 to vector<2x128xf32>
    %173 = arith.addf %172, %171 : vector<2x128xf32>
    %174 = arith.divf %172, %173 : vector<2x128xf32>
    %175 = math.tanh %169 : vector<2x128xf32>
    %176 = vector.extract_strided_slice %174 {offsets = [0, 0], sizes = [2, 32], strides = [1, 1]} : vector<2x128xf32> to vector<2x32xf32>
    %177 = vector.extract_strided_slice %174 {offsets = [0, 32], sizes = [2, 32], strides = [1, 1]} : vector<2x128xf32> to vector<2x32xf32>
    %178 = vector.extract_strided_slice %175 {offsets = [0, 64], sizes = [2, 32], strides = [1, 1]} : vector<2x128xf32> to vector<2x32xf32>
    %179 = vector.extract_strided_slice %174 {offsets = [0, 96], sizes = [2, 32], strides = [1, 1]} : vector<2x128xf32> to vector<2x32xf32>
    %180 = arith.mulf %177, %163 : vector<2x32xf32>
    %181 = arith.mulf %176, %178 : vector<2x32xf32>
    %182 = arith.addf %180, %181 : vector<2x32xf32>
    %183 = math.tanh %182 : vector<2x32xf32>
    %184 = arith.mulf %179, %183 : vector<2x32xf32>
    %185 = vector.shape_cast %51 : vector<2x32xf32> to vector<2x1x32xf32>
    %186 = vector.shape_cast %70 : vector<2x32xf32> to vector<2x1x32xf32>
    %187 = vector.shape_cast %89 : vector<2x32xf32> to vector<2x1x32xf32>
    %188 = vector.shape_cast %108 : vector<2x32xf32> to vector<2x1x32xf32>
    %189 = vector.shape_cast %127 : vector<2x32xf32> to vector<2x1x32xf32>
    %190 = vector.shape_cast %146 : vector<2x32xf32> to vector<2x1x32xf32>
    %191 = vector.shape_cast %165 : vector<2x32xf32> to vector<2x1x32xf32>
    %192 = vector.shape_cast %184 : vector<2x32xf32> to vector<2x1x32xf32>
    %193 = tpu.concatenate %185, %186, %187, %188, %189, %190, %191, %192 in 1 : vector<2x1x32xf32>, vector<2x1x32xf32>, vector<2x1x32xf32>, vector<2x1x32xf32>, vector<2x1x32xf32>, vector<2x1x32xf32>, vector<2x1x32xf32>, vector<2x1x32xf32> -> vector<2x8x32xf32>
    %194 = vector.shape_cast %8 : vector<1x32xf32> to vector<1x1x32xf32>
    %195 = vector.broadcast %194 : vector<1x1x32xf32> to vector<2x8x32xf32>
    %196 = arith.mulf %193, %195 : vector<2x8x32xf32>
    %cst_45 = arith.constant dense<0.000000e+00> : vector<2x8xf32>
    %197 = vector.multi_reduction <add>, %196, %cst_45 [2] : vector<2x8x32xf32> to vector<2x8xf32>
    %198 = vector.broadcast %9 : vector<1x1xf32> to vector<2x8xf32>
    %199 = arith.addf %197, %198 : vector<2x8xf32>
    %cst_46 = arith.constant dense<0xFF800000> : vector<2xf32>
    %200 = vector.multi_reduction <maximumf>, %199, %cst_46 [1] : vector<2x8xf32> to vector<2xf32>
    %201 = vector.shape_cast %200 : vector<2xf32> to vector<2x1xf32>
    %202 = vector.broadcast %201 : vector<2x1xf32> to vector<2x8xf32>
    %203 = arith.subf %199, %202 : vector<2x8xf32>
    %204 = math.exp %203 : vector<2x8xf32>
    %cst_47 = arith.constant dense<0.000000e+00> : vector<2xf32>
    %205 = vector.multi_reduction <add>, %204, %cst_47 [1] : vector<2x8xf32> to vector<2xf32>
    %206 = vector.shape_cast %205 : vector<2xf32> to vector<2x1xf32>
    %207 = vector.broadcast %206 : vector<2x1xf32> to vector<2x8xf32>
    %208 = arith.divf %204, %207 : vector<2x8xf32>
    %209 = vector.shape_cast %208 : vector<2x8xf32> to vector<2x8x1xf32>
    %210 = vector.broadcast %209 : vector<2x8x1xf32> to vector<2x8x32xf32>
    %211 = arith.mulf %210, %193 : vector<2x8x32xf32>
    %cst_48 = arith.constant dense<0.000000e+00> : vector<2x32xf32>
    %212 = vector.multi_reduction <add>, %211, %cst_48 [1] : vector<2x8x32xf32> to vector<2x32xf32>
    %c0_49 = arith.constant 0 : index
    %c0_50 = arith.constant 0 : index
    %213 = vector.load %arg6[%c0_49, %c0_50] : memref<32x64xf32, #tpu.memory_space<vmem>>, vector<32x64xf32>
    %cst_51 = arith.constant dense<0.000000e+00> : vector<2x64xf32>
    %214 = tpu.matmul %212, %213, %cst_51 {dimension_numbers = #tpu.dot_dimension_numbers<[1], [0], [0], [1], [0, 0, 1, 1], [], []>} : vector<2x32xf32>, vector<32x64xf32>, vector<2x64xf32> -> vector<2x64xf32>
    %215 = vector.broadcast %3 : vector<1x64xf32> to vector<2x64xf32>
    %216 = arith.addf %214, %215 : vector<2x64xf32>
    %cst_52 = arith.constant 0.000000e+00 : f32
    %217 = vector.broadcast %cst_52 : f32 to vector<2x64xf32>
    %218 = arith.maximumf %216, %217 : vector<2x64xf32>
    %219 = tpu.concatenate %22, %218 in 1 : vector<2x64xf32>, vector<2x64xf32> -> vector<2x128xf32>
    %c0_53 = arith.constant 0 : index
    %c0_54 = arith.constant 0 : index
    %220 = vector.load %arg7[%c0_53, %c0_54] : memref<128x128xf32, #tpu.memory_space<vmem>>, vector<128x128xf32>
    %cst_55 = arith.constant dense<0.000000e+00> : vector<2x128xf32>
    %221 = tpu.matmul %219, %220, %cst_55 {dimension_numbers = #tpu.dot_dimension_numbers<[1], [0], [0], [1], [0, 0, 1, 1], [], []>} : vector<2x128xf32>, vector<128x128xf32>, vector<2x128xf32> -> vector<2x128xf32>
    %222 = vector.broadcast %4 : vector<1x128xf32> to vector<2x128xf32>
    %223 = arith.addf %221, %222 : vector<2x128xf32>
    %cst_56 = arith.constant 0.000000e+00 : f32
    %224 = vector.broadcast %cst_56 : f32 to vector<2x128xf32>
    %225 = arith.maximumf %223, %224 : vector<2x128xf32>
    %226 = vector.extract_strided_slice %225 {offsets = [0, 0], sizes = [2, 64], strides = [1, 1]} : vector<2x128xf32> to vector<2x64xf32>
    %227 = vector.extract_strided_slice %225 {offsets = [0, 64], sizes = [2, 64], strides = [1, 1]} : vector<2x128xf32> to vector<2x64xf32>
    %c0_57 = arith.constant 0 : index
    %c0_58 = arith.constant 0 : index
    %228 = vector.load %arg8[%c0_57, %c0_58] : memref<64x32xf32, #tpu.memory_space<vmem>>, vector<64x32xf32>
    %cst_59 = arith.constant dense<0.000000e+00> : vector<2x32xf32>
    %229 = tpu.matmul %226, %228, %cst_59 {dimension_numbers = #tpu.dot_dimension_numbers<[1], [0], [0], [1], [0, 0, 1, 1], [], []>} : vector<2x64xf32>, vector<64x32xf32>, vector<2x32xf32> -> vector<2x32xf32>
    %230 = vector.broadcast %5 : vector<1x32xf32> to vector<2x32xf32>
    %231 = arith.addf %229, %230 : vector<2x32xf32>
    %cst_60 = arith.constant 0.000000e+00 : f32
    %232 = vector.broadcast %cst_60 : f32 to vector<2x32xf32>
    %233 = arith.maximumf %231, %232 : vector<2x32xf32>
    %c0_61 = arith.constant 0 : index
    %c0_62 = arith.constant 0 : index
    %234 = vector.load %arg9[%c0_61, %c0_62] : memref<32x6xf32, #tpu.memory_space<vmem>>, vector<32x6xf32>
    %cst_63 = arith.constant dense<0.000000e+00> : vector<2x6xf32>
    %235 = tpu.matmul %233, %234, %cst_63 {dimension_numbers = #tpu.dot_dimension_numbers<[1], [0], [0], [1], [0, 0, 1, 1], [], []>} : vector<2x32xf32>, vector<32x6xf32>, vector<2x6xf32> -> vector<2x6xf32>
    %236 = vector.broadcast %6 : vector<1x6xf32> to vector<2x6xf32>
    %237 = arith.addf %235, %236 : vector<2x6xf32>
    %c0_64 = arith.constant 0 : index
    %c0_65 = arith.constant 0 : index
    %238 = vector.load %arg10[%c0_64, %c0_65] : memref<64x36xf32, #tpu.memory_space<vmem>>, vector<64x36xf32>
    %cst_66 = arith.constant dense<0.000000e+00> : vector<2x36xf32>
    %239 = tpu.matmul %227, %238, %cst_66 {dimension_numbers = #tpu.dot_dimension_numbers<[1], [0], [0], [1], [0, 0, 1, 1], [], []>} : vector<2x64xf32>, vector<64x36xf32>, vector<2x36xf32> -> vector<2x36xf32>
    %240 = vector.broadcast %7 : vector<1x36xf32> to vector<2x36xf32>
    %241 = arith.addf %239, %240 : vector<2x36xf32>
    %242 = tpu.concatenate %237, %241 in 1 : vector<2x6xf32>, vector<2x36xf32> -> vector<2x42xf32>
    %c0_67 = arith.constant 0 : index
    %c0_68 = arith.constant 0 : index
    %243 = vector.load %arg12[%c0_67, %c0_68] : memref<2x42xf32, #tpu.memory_space<vmem>>, vector<2x42xf32>
    tpu.vector_store %arg12[%c0_67, %c0_68], %242 {strides = array<i32>} : memref<2x42xf32, #tpu.memory_space<vmem>>, vector<2x42xf32>,
    return
  }
}

</mosaic_0001>

<bundles_post_ra>
// kernel: hybrid_model_forward.1
= control target key start
LH: loop header
LB: loop body
LE: loop exit
PB: predicated region body
PF: predicated region fallthrough
CT: control target
= control target key end

     0   :  { %17 = vsyncpa [#allocation3], 0  ;;  %s3418_s0 = inlined_call_operand.vmem [shape: f32[2,18], index: 0, kind: input, shape index: {}]   ;;  %s3419_s1 = inlined_call_operand.vmem [shape: f32[2,8,4], index: 1, kind: input, shape index: {}]   ;;  %s3420_s2 = inlined_call_operand.vmem [shape: f32[4,128], index: 2, kind: input, shape index: {}]   ;;  %s3421_s3 = inlined_call_operand.hbm [shape: f32[32,128], index: 3, kind: input, shape index: {}]   ;;  %s3422_s4 = inlined_call_operand.hbm [shape: f32[18,128], index: 4, kind: input, shape index: {}]   ;;  %s3423_s5 = inlined_call_operand.vmem [shape: f32[128,64], index: 5, kind: input, shape index: {}]   ;;  %s3424_s6 = inlined_call_operand.hbm [shape: f32[32,64], index: 6, kind: input, shape index: {}]   ;;  %s3425_s7 = inlined_call_operand.hbm [shape: f32[128,128], index: 7, kind: input, shape index: {}]   ;;  %s3426_s8 = inlined_call_operand.hbm [shape: f32[64,32], index: 8, kind: input, shape index: {}]   ;;  %s3427_s9 = inlined_call_operand.hbm [shape: f32[32,6], index: 9, kind: input, shape index: {}]   ;;  %s3428_s10 = inlined_call_operand.hbm [shape: f32[64,36], index: 10, kind: input, shape index: {}]   ;;  %s3429_s11 = inlined_call_operand.hbm [shape: f32[1,1280], index: 11, kind: input, shape index: {}]   ;;  %s3430_s12 = inlined_call_operand.vmem [shape: f32[2,42], index: 12, kind: output, shape index: {}]  }
   0x1   :  { %18 = vsyncpa [#allocation5], 0 }
   0x2   :  { %19 = vsyncpa [#allocation8], 0 }
   0x3   :  { %20 = vsyncpa [#allocation11], 0 }
   0x4   :  { %21 = vsyncpa [#allocation14], 0  ;;  %s2868_s21 = smov [#allocation4]   ;;  %s2869_s23 = smov [#allocation7]  }
   0x5   :  { %s45_s22 = sshll.u32 %s2868_s21, 4  ;;  %s71_s24 = sshll.u32 %s2869_s23, 4  ;;  %s46_s22 = int_to_ptr.vmem [resolvable:$true] %s45_s22  ;;  %s72_s24 = int_to_ptr.vmem [resolvable:$true] %s71_s24 }
   0x6   :  { %s2706_s25 = scalar_lea.vmem %s46_s22, 384  ;;  %p2711_p1 = scmp.lt.s32.totalorder %s46_s22, %s46_s22 }
   0x7   :  { %p2707_p0 = scmp.ne.s32.totalorder %s46_s22, %s2706_s25  ;;  %p2712_p2 = scmp.lt.s32.totalorder %s2706_s25, %s2706_s25 }
   0x9   :  { %p2713_p3 = por %p2712_p2, %p2711_p1 }
   0xb   :  { %p2714_p4 = pnand %p2713_p3, %p2707_p0 }
   0xd   :  { %2717 = shalt.err (!%p2714_p4)
}
   0xe   :  { %s2870_s26 = smov 128   ;;  %s2871_s27 = smov 8  }
   0xf   :  { %51 = dma.hbm_to_vmem [thread:$0]  %s3422_s4, 384, %s46_s22, [#allocation5], %s2870_s26, %s2870_s26, %s2871_s27  }
  0x10   :  { %s2726_s30 = scalar_lea.vmem %s72_s24, 2048  ;;  %p2731_p6 = scmp.lt.s32.totalorder %s72_s24, %s72_s24 }
  0x11   :  { %p2727_p5 = scmp.ne.s32.totalorder %s72_s24, %s2726_s30  ;;  %p2732_p7 = scmp.lt.s32.totalorder %s2726_s30, %s2726_s30 }
  0x13   :  { %p2733_p8 = por %p2732_p7, %p2731_p6 }
  0x15   :  { %p2734_p9 = pnand %p2733_p8, %p2727_p5 }
  0x17   :  { %2737 = shalt.err (!%p2734_p9)
}
  0x18   :  { %77 = dma.hbm_to_vmem [thread:$0]  %s3425_s7, 2048, %s72_s24, [#allocation8], %s2870_s26, %s2870_s26, %s2871_s27  }
  0x19   :  { %s2872_s15 = smov [#allocation10]   ;;  %s2873_s17 = smov [#allocation2]  }
  0x1a   :  { %s95_s16 = sshll.u32 %s2872_s15, 4  ;;  %s33_s18 = sshll.u32 %s2873_s17, 4  ;;  %s96_s16 = int_to_ptr.vmem [resolvable:$true] %s95_s16  ;;  %s34_s18 = int_to_ptr.vmem [resolvable:$true] %s33_s18 }
  0x1b   :  { %s2746_s4 = scalar_lea.vmem %s96_s16, 512  ;;  %p2751_p11 = scmp.lt.s32.totalorder %s96_s16, %s96_s16 }
  0x1c   :  { %p2747_p10 = scmp.ne.s32.totalorder %s96_s16, %s2746_s4  ;;  %p2752_p12 = scmp.lt.s32.totalorder %s2746_s4, %s2746_s4 }
  0x1e   :  { %p2753_p13 = por %p2752_p12, %p2751_p11 }
  0x20   :  { %p2754_p0 = pnand %p2753_p13, %p2747_p10 }
  0x22   :  { %2757 = shalt.err (!%p2754_p0)
}
  0x23   :  { %101 = dma.hbm_to_vmem [thread:$0]  %s3427_s9, 512, %s96_s16, [#allocation11], %s2870_s26, %s2870_s26, %s2871_s27  }
  0x24   :  { %s2766_s7 = scalar_lea.vmem %s34_s18, 512  ;;  %p2771_p2 = scmp.lt.s32.totalorder %s34_s18, %s34_s18 }
  0x25   :  { %p2767_p1 = scmp.ne.s32.totalorder %s34_s18, %s2766_s7  ;;  %p2772_p3 = scmp.lt.s32.totalorder %s2766_s7, %s2766_s7 }
  0x27   :  { %p2773_p4 = por %p2772_p3, %p2771_p2 }
  0x29   :  { %p2774_p5 = pnand %p2773_p4, %p2767_p1 }
  0x2b   :  { %2777 = shalt.err (!%p2774_p5)
}
  0x2c   :  { %39 = dma.hbm_to_vmem [thread:$0]  %s3421_s3, 512, %s34_s18, [#allocation3], %s2870_s26, %s2870_s26, %s2871_s27  }
  0x2d   :  { %s2874_s23 = smov [#allocation6]   ;;  %s2875_s25 = smov [#allocation9]  }
  0x2e   :  { %s59_s24 = sshll.u32 %s2874_s23, 4  ;;  %s83_s28 = sshll.u32 %s2875_s25, 4  ;;  %s60_s24 = int_to_ptr.vmem [resolvable:$true] %s59_s24  ;;  %s84_s28 = int_to_ptr.vmem [resolvable:$true] %s83_s28 }
  0x2f   :  { %s2786_s9 = scalar_lea.vmem %s60_s24, 512  ;;  %p2791_p7 = scmp.lt.s32.totalorder %s60_s24, %s60_s24 }
  0x30   :  { %p2787_p6 = scmp.ne.s32.totalorder %s60_s24, %s2786_s9  ;;  %p2792_p8 = scmp.lt.s32.totalorder %s2786_s9, %s2786_s9 }
  0x32   :  { %p2793_p9 = por %p2792_p8, %p2791_p7 }
  0x34   :  { %p2794_p10 = pnand %p2793_p9, %p2787_p6 }
  0x36   :  { %2797 = shalt.err (!%p2794_p10)
}
  0x37   :  { %65 = dma.hbm_to_vmem [thread:$0]  %s3424_s6, 512, %s60_s24, [#allocation5], %s2870_s26, %s2870_s26, %s2871_s27  }
  0x38   :  { %s2806_s3 = scalar_lea.vmem %s84_s28, 1024  ;;  %p2811_p12 = scmp.lt.s32.totalorder %s84_s28, %s84_s28 }
  0x39   :  { %p2807_p11 = scmp.ne.s32.totalorder %s84_s28, %s2806_s3  ;;  %p2812_p13 = scmp.lt.s32.totalorder %s2806_s3, %s2806_s3 }
  0x3b   :  { %p2813_p0 = por %p2812_p13, %p2811_p12 }
  0x3d   :  { %p2814_p1 = pnand %p2813_p0, %p2807_p11 }
  0x3f   :  { %2817 = shalt.err (!%p2814_p1)
}
  0x40   :  { %89 = dma.hbm_to_vmem [thread:$0]  %s3426_s8, 1024, %s84_s28, [#allocation8], %s2870_s26, %s2870_s26, %s2871_s27  }
  0x41   :  { %s2876_s15 = smov [#allocation12]   ;;  %s2877_s17 = smov [#allocation13]  }
  0x42   :  { %s107_s16 = sshll.u32 %s2876_s15, 4  ;;  %s120_s18 = sshll.u32 %s2877_s17, 4  ;;  %s108_s16 = int_to_ptr.vmem [resolvable:$true] %s107_s16  ;;  %s121_s18 = int_to_ptr.vmem [resolvable:$true] %s120_s18 }
  0x43   :  { %s2826_s6 = scalar_lea.vmem %s108_s16, 1024  ;;  %p2831_p3 = scmp.lt.s32.totalorder %s108_s16, %s108_s16 }
  0x44   :  { %p2827_p2 = scmp.ne.s32.totalorder %s108_s16, %s2826_s6  ;;  %p2832_p4 = scmp.lt.s32.totalorder %s2826_s6, %s2826_s6 }
  0x46   :  { %p2833_p5 = por %p2832_p4, %p2831_p3 }
  0x48   :  { %p2834_p6 = pnand %p2833_p5, %p2827_p2 }
  0x4a   :  { %2837 = shalt.err (!%p2834_p6)
}
  0x4b   :  { %113 = dma.hbm_to_vmem [thread:$0]  %s3428_s10, 1024, %s108_s16, [#allocation11], %s2870_s26, %s2870_s26, %s2871_s27  }
  0x4c   :  { %s2846_s8 = scalar_lea.vmem %s121_s18, 160  ;;  %p2851_p8 = scmp.lt.s32.totalorder %s121_s18, %s121_s18 }
  0x4d   :  { %p2847_p7 = scmp.ne.s32.totalorder %s121_s18, %s2846_s8  ;;  %p2852_p9 = scmp.lt.s32.totalorder %s2846_s8, %s2846_s8 }
  0x4f   :  { %p2853_p10 = por %p2852_p9, %p2851_p8 }
  0x51   :  { %p2854_p11 = pnand %p2853_p10, %p2847_p7 }
  0x53   :  { %2857 = shalt.err (!%p2854_p11)
}
  0x54   :  { %123 = dma.hbm_to_vmem [thread:$0]  %s3429_s11, 160, %s121_s18, [#allocation14]  }
  0x55   :  { %2858 = dma.done.wait [#allocation3], 512  }
  0x56   :  { %2859 = vsyncadd [#allocation3], 4294966784 }
  0x57   :  { %2860 = dma.done.wait [#allocation5], 896  }
  0x58   :  { %2861 = vsyncadd [#allocation5], 4294966400 }
  0x59   :  { %2862 = dma.done.wait [#allocation8], 3072  }
  0x5a   :  { %2863 = vsyncadd [#allocation8], 4294964224 }
  0x5b   :  { %2864 = dma.done.wait [#allocation11], 1536  }
  0x5c   :  { %2865 = vsyncadd [#allocation11], 4294965760 }
  0x5d   :  { %2866 = dma.done.wait [#allocation14], 160  }
  0x5e   :  { %2867 = vsyncadd [#allocation14], 4294967136  ;;  %v2878_v0 = vmov 0.0   ;;  %vm2879_vm0 = vmmov 0   ;;  %vm356_vm1 = vcmask 1043456   ;;  %vm349_vm2 = vcmask 31744  }
  0x5f   :  { %2311 = vmatprep.subr.mxu1 %v2878_v0  ;;  %2317 = vmatprep.mubr.msk.f32.mxu1 %vm2879_vm0, %v2878_v0  ;;  %v342_v1 = vld [vmem:[%s3420_s2] sm:$0xf]  ;;  %v341_v3 = vld [vmem:[%s3419_s1 + $0x8] sm:$0xff]  ;;  %v3008_v4 = vld [vmem:[#allocation2 + $0x18] sm:$0xff]  ;;  %s2881_s2 = smov 32   ;;  %vm570_vm3 = vcmask 1041409  }
  0x60   :  { %v340_v2 = vld [vmem:[%s3419_s1] sm:$0xff]  ;;  %2355 = vmatprep.subr.msk.mxu0 %vm356_vm1, %v342_v1  ;;  %v3012_v5 = vld [vmem:[#allocation2 + $0x10] sm:$0xff]  ;;  %v3018_v6 = vld [vmem:[#allocation2 + $0x8] sm:$0xff]  ;;  %s2880_s1 = smov 64   ;;  %vm439_vm4 = vcmask 261120   ;;  %vm172_vm5 = vcmask 1041408  }
  0x61   :  { %2357 = vmatprep.mubr.msk.f32.mxu0 %vm349_vm2, %v340_v2  ;;  %2356 = vmatpush3.msk.msra.mxu0 %vm356_vm1, %v342_v1  ;;  %v3022_v7 = vld [vmem:[#allocation2] sm:$0xff]  ;;  %v2164_v9 = vld [vmem:[#allocation13] ss:$0 sm:$0xff]  ;;  %vm168_vm6 = vcmask 146432   ;;  %vm1545_vm7 = vcmask 1040384   ;;  %vm1550_vm8 = vcmask 1042432  }
  0x62   :  { %2358 = vmatmul.mubr.msk.f32.vlgmr.msra.gmra.mxu0 %vm349_vm2, %v341_v3  ;;  %2360 = vmatprep.subr.mxu0 %v2878_v0  ;;  %vm1555_vm9 = vcmask 1044480   ;;  %vm1558_vm10 = vcmask 1045504   ;;  %vm1561_vm11 = vcmask 1046528   ;;  %vm1613_vm12 = vcmask 58368  }
  0x63   :  { %2361 = vmatpush3.msra.mxu0 %v3008_v4  ;;  %2368 = vmatprep.mubr.msk.f32.mxu0 %vm2879_vm0, %v2878_v0  ;;  %vm1682_vm13 = vcmask 1048320   ;;  %vm1789_vm14 = vcmask 523264   ;;  %vm2147_vm15 = vcmask 48128  }
  0x64   :  { %2362 = vmatprep.subr.mxu0 %v2878_v0 }
  0x65   :  { %2363 = vmatpush3.msra.mxu0 %v3012_v5 }
  0x66   :  { %2364 = vmatprep.subr.mxu0 %v2878_v0 }
  0x67   :  { %2365 = vmatpush3.msra.mxu0 %v3018_v6 }
  0x68   :  { %2366 = vmatprep.subr.mxu0 %v2878_v0 }
  0x69   :  { %2367 = vmatpush3.msra.mxu0 %v3022_v7 }
  0x6a   :  { %2369 = vmatmul.mubr.f32.vlgmr.msra.gmra.mxu0 %v2878_v0  ;;  %2371 = vmatprep.subr.mxu0 %v2878_v0 }
  0x6b   :  { %2372 = vmatpush3.msra.mxu0 %v3008_v4  ;;  %2379 = vmatprep.mubr.msk.f32.mxu0 %vm2879_vm0, %v2878_v0 }
  0x6c   :  { %2373 = vmatprep.subr.mxu0 %v2878_v0 }
  0x6d   :  { %2374 = vmatpush3.msra.mxu0 %v3012_v5 }
  0x6e   :  { %2375 = vmatprep.subr.mxu0 %v2878_v0 }
  0x6f   :  { %2376 = vmatpush3.msra.mxu0 %v3018_v6 }
  0x70   :  { %2377 = vmatprep.subr.mxu0 %v2878_v0 }
  0x71   :  { %2378 = vmatpush3.msra.mxu0 %v3022_v7 }
  0x72   :  { %2382 = vmatprep.subr.mxu0 %v2878_v0 }
 0x122   :  { %v2359_v8 = vpop.f32.mrf.mxu0 }
 0x123   :  { %v3039_v12 = vadd.f32 %v2359_v8, %v2164_v9 }
 0x124   :  { %v426_v10 = vpop.f32.mrf.mxu0 }
 0x125   :  { %v3042_v16 = vadd.f32 %v2164_v9, %v426_v10 }
 0x12a   :  { %v509_v11 = vpop.f32.mrf.mxu0 }
 0x12b   :  { %v514_v13 = vrot.slane %v509_v11, 1  ;;  %v517_v17 = vadd.f32 %v509_v11, %v3042_v16 }
 0x12c   :  { %v2370_v14 = vpop.f32.mrf.mxu0 }
 0x12d   :  { %v518_v15 = vadd.f32 %v514_v13, %v3039_v12  ;;  %v2168_v21 = vmul.f32 -1.442695, %v517_v17 }
 0x12f   :  { %2562 = vtanh.f32 %v518_v15  ;;  %v2169_v20 = vmul.f32 -1.442695, %v518_v15 }
 0x130   :  { %2564 = vtanh.f32 %v517_v17 }
 0x131   :  { %2566 = vpow2.f32 %v2169_v20 }
 0x132   :  { %2568 = vpow2.f32 %v2168_v21 }
 0x13c   :  { %v2563_v18 = vpop.eup %2562 }
 0x13d   :  { %539 = vrot.lane.b32.xlu0 %v2563_v18, %s2880_s1  ;;  %v2565_v19 = vpop.eup %2564 }
 0x13e   :  { %v2567_v22 = vpop.eup %2566 }
 0x13f   :  { %v526_v23 = vadd.f32 1.0, %v2567_v22  ;;  %v2569_v24 = vpop.eup %2568 }
 0x140   :  { %v525_v25 = vadd.f32 1.0, %v2569_v24 }
 0x141   :  { %537 = vrot.lane.b32.xlu0 %v2565_v19, %s2880_s1  ;;  %2570 = vrcp.f32 %v526_v23 }
 0x142   :  { %2572 = vrcp.f32 %v525_v25 }
 0x14e   :  { %v2571_v26 = vpop.eup %2570 }
 0x14f   :  { %v2573_v29 = vpop.eup %2572  ;;  %v534_v32 = vmul.f32 0.0, %v2571_v26 }
 0x150   :  { %v533_v35 = vmul.f32 0.0, %v2573_v29 }
 0x1af   :  { %v540_v27 = vpop.permute.xlu0 %539 }
 0x1b0   :  { %v544_v28 = vmul.f32 %v2571_v26, %v540_v27 }
 0x1b2   :  { %549 = vrot.lane.b32.xlu1 %v544_v28, %s2881_s2 }
 0x1b3   :  { %v538_v30 = vpop.permute.xlu0 %537 }
 0x1b4   :  { %v543_v31 = vmul.f32 %v2573_v29, %v538_v30 }
 0x1b6   :  { %547 = vrot.lane.b32.xlu1 %v543_v31, %s2881_s2 }
 0x224   :  { %v550_v33 = vpop.permute.xlu1 %549 }
 0x225   :  { %v554_v34 = vadd.f32 %v550_v33, %v534_v32 }
 0x227   :  { %2574 = vtanh.f32 %v554_v34  ;;  %v669_v3 = vrot.slane %v554_v34, 7 }
 0x228   :  { %v548_v36 = vpop.permute.xlu1 %547 }
 0x229   :  { %v553_v37 = vadd.f32 %v548_v36, %v533_v35 }
 0x22b   :  { %2576 = vtanh.f32 %v553_v37  ;;  %v668_v9 = vrot.slane %v553_v37, 7 }
 0x234   :  { %v2575_v38 = vpop.eup %2574 }
 0x235   :  { %561 = vrot.lane.b32.xlu0 %v2575_v38, %s2880_s1 }
 0x238   :  { %v2577_v39 = vpop.eup %2576 }
 0x239   :  { %559 = vrot.lane.b32.xlu1 %v2577_v39, %s2880_s1 }
 0x2a7   :  { %v562_v40 = vpop.permute.xlu0 %561 }
 0x2a8   :  { %v3051_v41 = vmul.f32 %v2571_v26, %v562_v40 }
 0x2aa   :  { %v569_v43 = vrot.slane %v3051_v41, 7 }
 0x2ab   :  { %v560_v42 = vpop.permute.xlu1 %559 }
 0x2ac   :  { %v3054_v44 = vmul.f32 %v2573_v29, %v560_v42 }
 0x2ae   :  { %v571_v45 = vsel %vm570_vm3, %v569_v43, %v3054_v44 }
 0x2af   :  { %572 = vrot.lane.b32.xlu0 %v571_v45, %s2881_s2 }
 0x321   :  { %v573_v46 = vpop.permute.xlu0 %572 }
 0x322   :  { %2380 = vmatmul.mubr.msk.f32.vlgmr.msra.gmra.mxu0 %vm439_vm4, %v573_v46 }
 0x323   :  { %2383 = vmatpush3.msra.mxu0 %v3008_v4  ;;  %2390 = vmatprep.mubr.msk.f32.mxu0 %vm2879_vm0, %v2878_v0 }
 0x324   :  { %2384 = vmatprep.subr.mxu0 %v2878_v0 }
 0x325   :  { %2385 = vmatpush3.msra.mxu0 %v3012_v5 }
 0x326   :  { %2386 = vmatprep.subr.mxu0 %v2878_v0 }
 0x327   :  { %2387 = vmatpush3.msra.mxu0 %v3018_v6 }
 0x328   :  { %2388 = vmatprep.subr.mxu0 %v2878_v0 }
 0x329   :  { %2389 = vmatpush3.msra.mxu0 %v3022_v7 }
 0x32a   :  { %2404 = vmatprep.subr.mxu0 %v2878_v0 }
 0x3e2   :  { %v642_v47 = vpop.f32.mrf.mxu0 }
 0x3e3   :  { %v647_v48 = vrot.slane %v642_v47, 7  ;;  %v651_v49 = vadd.f32 %v642_v47, %v3039_v12 }
 0x3e4   :  { %v2381_v50 = vpop.f32.mrf.mxu0 }
 0x3e5   :  { %v650_v51 = vadd.f32 %v647_v48, %v3042_v16  ;;  %2578 = vtanh.f32 %v651_v49  ;;  %v2172_v54 = vmul.f32 -1.442695, %v651_v49  ;;  %v161_v48 = vld [vmem:[#allocation4 + $0x10] sm:$0x3]  ;;  %v160_v49 = vld [vmem:[#allocation4 + $0x8] sm:$0xff]  ;;  %v159_v50 = vld [vmem:[#allocation4] sm:$0xff] }
 0x3e6   :  { %2312 = vmatpush3.msk.msra.mxu1 %vm172_vm5, %v161_v48 }
 0x3e7   :  { %2580 = vtanh.f32 %v650_v51  ;;  %v2171_v55 = vmul.f32 -1.442695, %v650_v51  ;;  %2313 = vmatprep.subr.mxu1 %v2878_v0  ;;  %v158_v51 = vld [vmem:[%s3418_s0] sm:$0x3] }
 0x3e8   :  { %2582 = vpow2.f32 %v2172_v54  ;;  %2314 = vmatpush3.msra.mxu1 %v160_v49 }
 0x3e9   :  { %2584 = vpow2.f32 %v2171_v55  ;;  %2315 = vmatprep.subr.mxu1 %v2878_v0 }
 0x3ea   :  { %2316 = vmatpush3.msra.mxu1 %v159_v50 }
 0x3eb   :  { %2318 = vmatmul.mubr.msk.f32.vlgmr.msra.gmra.mxu1 %vm168_vm6, %v158_v51  ;;  %2320 = vmatprep.subr.mxu1 %v2878_v0 }
 0x3ec   :  { %2352 = vmatprep.mubr.msk.f32.mxu1 %vm2879_vm0, %v2878_v0 }
 0x3f2   :  { %v2579_v52 = vpop.eup %2578 }
 0x3f3   :  { %678 = vrot.lane.b32.xlu0 %v2579_v52, %s2880_s1 }
 0x3f4   :  { %v2581_v53 = vpop.eup %2580 }
 0x3f5   :  { %676 = vrot.lane.b32.xlu1 %v2581_v53, %s2880_s1  ;;  %v2583_v56 = vpop.eup %2582 }
 0x3f6   :  { %v2585_v57 = vpop.eup %2584  ;;  %v659_v58 = vadd.f32 1.0, %v2583_v56 }
 0x3f7   :  { %v658_v59 = vadd.f32 1.0, %v2585_v57 }
 0x3f8   :  { %2586 = vrcp.f32 %v659_v58 }
 0x3f9   :  { %2588 = vrcp.f32 %v658_v59 }
 0x405   :  { %v2587_v60 = vpop.eup %2586 }
 0x406   :  { %v2589_v63 = vpop.eup %2588  ;;  %v673_v8 = vmul.f32 %v2587_v60, %v669_v3 }
 0x407   :  { %v672_v13 = vmul.f32 %v2589_v63, %v668_v9  ;;  %v256_v9 = vld [vmem:[%s3423_s5 + $0x48] sm:$0xff] }
 0x465   :  { %v679_v61 = vpop.permute.xlu0 %678 }
 0x466   :  { %v683_v62 = vmul.f32 %v2587_v60, %v679_v61  ;;  %v261_v61 = vld [vmem:[%s3423_s5 + $0x70] sm:$0xff] }
 0x467   :  { %v677_v1 = vpop.permute.xlu1 %676 }
 0x468   :  { %688 = vrot.lane.b32.xlu0 %v683_v62, %s2881_s2  ;;  %v682_v2 = vmul.f32 %v2589_v63, %v677_v1  ;;  %v260_v62 = vld [vmem:[%s3423_s5 + $0x68] sm:$0xff] }
 0x46a   :  { %686 = vrot.lane.b32.xlu1 %v682_v2, %s2881_s2  ;;  %v258_v2 = vld [vmem:[%s3423_s5 + $0x58] sm:$0xff] }
 0x4da   :  { %v689_v10 = vpop.permute.xlu0 %688 }
 0x4db   :  { %v3076_v11 = vadd.f32 %v689_v10, %v673_v8  ;;  %v257_v8 = vld [vmem:[%s3423_s5 + $0x50] sm:$0xff]  ;;  %v255_v10 = vld [vmem:[%s3423_s5 + $0x40] sm:$0xff] }
 0x4dc   :  { %v687_v14 = vpop.permute.xlu1 %686 }
 0x4dd   :  { %2590 = vtanh.f32 %v3076_v11  ;;  %v3079_v15 = vadd.f32 %v687_v14, %v672_v13  ;;  %v808_v53 = vrot.slane %v3076_v11, 7  ;;  %v254_v11 = vld [vmem:[%s3423_s5 + $0x38] sm:$0xff]  ;;  %v253_v13 = vld [vmem:[%s3423_s5 + $0x30] sm:$0xff]  ;;  %v252_v14 = vld [vmem:[%s3423_s5 + $0x28] sm:$0xff] }
 0x4df   :  { %2592 = vtanh.f32 %v3079_v15  ;;  %v807_v52 = vrot.slane %v3079_v15, 7  ;;  %v251_v15 = vld [vmem:[%s3423_s5 + $0x20] sm:$0xff] }
 0x4ea   :  { %v2591_v17 = vpop.eup %2590 }
 0x4eb   :  { %700 = vrot.lane.b32.xlu0 %v2591_v17, %s2880_s1  ;;  %v250_v17 = vld [vmem:[%s3423_s5 + $0x18] sm:$0xff] }
 0x4ec   :  { %v2593_v18 = vpop.eup %2592 }
 0x4ed   :  { %698 = vrot.lane.b32.xlu1 %v2593_v18, %s2880_s1  ;;  %v249_v18 = vld [vmem:[%s3423_s5 + $0x10] sm:$0xff] }
 0x55d   :  { %v701_v19 = vpop.permute.xlu0 %700 }
 0x55e   :  { %v3086_v22 = vmul.f32 %v2587_v60, %v701_v19  ;;  %v262_v60 = vld [vmem:[%s3423_s5 + $0x78] sm:$0xff]  ;;  %v248_v19 = vld [vmem:[%s3423_s5 + $0x8] sm:$0xff] }
 0x55f   :  { %v699_v20 = vpop.permute.xlu1 %698  ;;  %2321 = vmatpush3.msra.mxu1 %v262_v60 }
 0x560   :  { %v3084_v21 = vmul.f32 %v2589_v63, %v699_v20  ;;  %2322 = vmatprep.subr.mxu1 %v2878_v0  ;;  %v259_v63 = vld [vmem:[%s3423_s5 + $0x60] sm:$0xff] }
 0x561   :  { %2323 = vmatpush3.msra.mxu1 %v261_v61  ;;  %v247_v20 = vld [vmem:[%s3423_s5] sm:$0xff]  ;;  %s2882_s5 = smov 96  }
 0x562   :  { %v708_v23 = vrot.slane %v3084_v21, 1  ;;  %2324 = vmatprep.subr.mxu1 %v2878_v0 }
 0x563   :  { %2325 = vmatpush3.msra.mxu1 %v260_v62 }
 0x564   :  { %v709_v24 = vsel %vm570_vm3, %v3086_v22, %v708_v23  ;;  %2326 = vmatprep.subr.mxu1 %v2878_v0  ;;  %v2160_v23 = vld [vmem:[#allocation13 + $0x1] ss:$0 sm:$0xff] }
 0x565   :  { %710 = vrot.lane.b32.xlu1 %v709_v24, %s2881_s2  ;;  %2327 = vmatpush3.msra.mxu1 %v259_v63  ;;  %v242_v24 = vpop.f32.mrf.mxu1 }
 0x566   :  { %2328 = vmatprep.subr.mxu1 %v2878_v0 }
 0x567   :  { %2329 = vmatpush3.msra.mxu1 %v258_v2 }
 0x568   :  { %2330 = vmatprep.subr.mxu1 %v2878_v0 }
 0x569   :  { %2331 = vmatpush3.msra.mxu1 %v257_v8 }
 0x56a   :  { %2332 = vmatprep.subr.mxu1 %v2878_v0 }
 0x56b   :  { %2333 = vmatpush3.msra.mxu1 %v256_v9 }
 0x56c   :  { %2334 = vmatprep.subr.mxu1 %v2878_v0 }
 0x56d   :  { %2335 = vmatpush3.msra.mxu1 %v255_v10 }
 0x56e   :  { %2336 = vmatprep.subr.mxu1 %v2878_v0 }
 0x56f   :  { %2337 = vmatpush3.msra.mxu1 %v254_v11 }
 0x570   :  { %2338 = vmatprep.subr.mxu1 %v2878_v0 }
 0x571   :  { %2339 = vmatpush3.msra.mxu1 %v253_v13 }
 0x572   :  { %2340 = vmatprep.subr.mxu1 %v2878_v0 }
 0x573   :  { %2341 = vmatpush3.msra.mxu1 %v252_v14 }
 0x574   :  { %2342 = vmatprep.subr.mxu1 %v2878_v0 }
 0x575   :  { %2343 = vmatpush3.msra.mxu1 %v251_v15 }
 0x576   :  { %2344 = vmatprep.subr.mxu1 %v2878_v0 }
 0x577   :  { %2345 = vmatpush3.msra.mxu1 %v250_v17 }
 0x578   :  { %2346 = vmatprep.subr.mxu1 %v2878_v0 }
 0x579   :  { %2347 = vmatpush3.msra.mxu1 %v249_v18 }
 0x57a   :  { %2348 = vmatprep.subr.mxu1 %v2878_v0 }
 0x57b   :  { %2349 = vmatpush3.msra.mxu1 %v248_v19 }
 0x57c   :  { %2350 = vmatprep.subr.mxu1 %v2878_v0 }
 0x57d   :  { %2351 = vmatpush3.msra.mxu1 %v247_v20 }
 0x57e   :  { %2393 = vmatprep.subr.mxu1 %v2878_v0 }
 0x5d7   :  { %v711_v25 = vpop.permute.xlu1 %710 }
 0x5d8   :  { %2391 = vmatmul.mubr.msk.f32.vlgmr.msra.gmra.mxu0 %vm439_vm4, %v711_v25  ;;  %v243_v25 = vadd.f32 %v2160_v23, %v242_v24 }
 0x5d9   :  { %2405 = vmatpush3.msra.mxu0 %v3008_v4  ;;  %2412 = vmatprep.mubr.msk.f32.mxu0 %vm2879_vm0, %v2878_v0 }
 0x5da   :  { %2406 = vmatprep.subr.mxu0 %v2878_v0 }
 0x5db   :  { %2407 = vmatpush3.msra.mxu0 %v3012_v5 }
 0x5dc   :  { %2408 = vmatprep.subr.mxu0 %v2878_v0 }
 0x5dd   :  { %2409 = vmatpush3.msra.mxu0 %v3018_v6 }
 0x5de   :  { %2410 = vmatprep.subr.mxu0 %v2878_v0 }
 0x5df   :  { %2411 = vmatpush3.msra.mxu0 %v3022_v7 }
 0x5e0   :  { %2426 = vmatprep.subr.mxu0 %v2878_v0 }
 0x698   :  { %v780_v26 = vpop.f32.mrf.mxu0 }
 0x699   :  { %v785_v27 = vrot.slane %v780_v26, 6  ;;  %v786_v28 = vrot.slane %v780_v26, 7  ;;  %v2319_v26 = vpop.f32.mrf.mxu1 }
 0x69a   :  { %v2392_v29 = vpop.f32.mrf.mxu0 }
 0x69b   :  { %v789_v30 = vadd.f32 %v785_v27, %v3042_v16  ;;  %v790_v31 = vadd.f32 %v786_v28, %v3039_v12  ;;  %v246_v27 = vmax.f32 %v243_v25, 0.0 }
 0x69d   :  { %2594 = vtanh.f32 %v789_v30  ;;  %v2174_v34 = vmul.f32 -1.442695, %v789_v30  ;;  %v2175_v35 = vmul.f32 -1.442695, %v790_v31  ;;  %2353 = vmatmul.mubr.f32.vlgmr.msra.gmra.mxu1 %v246_v27 }
 0x69e   :  { %2596 = vtanh.f32 %v790_v31  ;;  %2394 = vmatpush3.msra.mxu1 %v3008_v4  ;;  %2401 = vmatprep.mubr.msk.f32.mxu1 %vm2879_vm0, %v2878_v0  ;;  %v1546_v31 = vsel %vm1545_vm7, %v3054_v44, %v3084_v21 }
 0x69f   :  { %2598 = vpow2.f32 %v2174_v34  ;;  %2395 = vmatprep.subr.mxu1 %v2878_v0 }
 0x6a0   :  { %2600 = vpow2.f32 %v2175_v35  ;;  %2396 = vmatpush3.msra.mxu1 %v3012_v5 }
 0x6a1   :  { %2397 = vmatprep.subr.mxu1 %v2878_v0 }
 0x6a2   :  { %2398 = vmatpush3.msra.mxu1 %v3018_v6 }
 0x6a3   :  { %2399 = vmatprep.subr.mxu1 %v2878_v0 }
 0x6a4   :  { %2400 = vmatpush3.msra.mxu1 %v3022_v7 }
 0x6a5   :  { %2415 = vmatprep.subr.mxu1 %v2878_v0 }
 0x6aa   :  { %v2595_v32 = vpop.eup %2594 }
 0x6ab   :  { %v2597_v33 = vpop.eup %2596  ;;  %815 = vrot.lane.b32.xlu0 %v2595_v32, %s2880_s1 }
 0x6ac   :  { %817 = vrot.lane.b32.xlu1 %v2597_v33, %s2880_s1  ;;  %v2599_v36 = vpop.eup %2598  ;;  %v1547_v33 = vsel %vm1545_vm7, %v3051_v41, %v3086_v22 }
 0x6ad   :  { %v2601_v37 = vpop.eup %2600  ;;  %v797_v38 = vadd.f32 1.0, %v2599_v36 }
 0x6ae   :  { %v798_v39 = vadd.f32 1.0, %v2601_v37 }
 0x6af   :  { %2602 = vrcp.f32 %v797_v38 }
 0x6b0   :  { %2604 = vrcp.f32 %v798_v39 }
 0x6bc   :  { %v3107_v40 = vpop.eup %2602 }
 0x6bd   :  { %v3109_v43 = vpop.eup %2604  ;;  %v811_v54 = vmul.f32 %v3107_v40, %v807_v52 }
 0x6be   :  { %v812_v55 = vmul.f32 %v3109_v43, %v808_v53 }
 0x71d   :  { %v816_v42 = vpop.permute.xlu0 %815 }
 0x71e   :  { %v818_v45 = vpop.permute.xlu1 %817  ;;  %v821_v46 = vmul.f32 %v3107_v40, %v816_v42 }
 0x71f   :  { %v822_v47 = vmul.f32 %v3109_v43, %v818_v45 }
 0x720   :  { %825 = vrot.lane.b32.xlu0 %v821_v46, %s2881_s2 }
 0x721   :  { %827 = vrot.lane.b32.xlu1 %v822_v47, %s2881_s2 }
 0x75d   :  { %v3235_v41 = vpop.f32.mrf.mxu1 }
 0x75f   :  { %v2354_v44 = vpop.f32.mrf.mxu1 }
 0x792   :  { %v826_v56 = vpop.permute.xlu0 %825 }
 0x793   :  { %v828_v57 = vpop.permute.xlu1 %827  ;;  %v3128_v58 = vadd.f32 %v826_v56, %v811_v54 }
 0x794   :  { %v3130_v59 = vadd.f32 %v828_v57, %v812_v55 }
 0x795   :  { %2606 = vtanh.f32 %v3128_v58  ;;  %v947_v62 = vrot.slane %v3128_v58, 7 }
 0x796   :  { %2608 = vtanh.f32 %v3130_v59  ;;  %v948_v63 = vrot.slane %v3130_v59, 7 }
 0x7a2   :  { %v2607_v1 = vpop.eup %2606 }
 0x7a3   :  { %v2609_v3 = vpop.eup %2608  ;;  %837 = vrot.lane.b32.xlu0 %v2607_v1, %s2880_s1 }
 0x7a4   :  { %839 = vrot.lane.b32.xlu1 %v2609_v3, %s2880_s1 }
 0x815   :  { %v838_v28 = vpop.permute.xlu0 %837 }
 0x816   :  { %v840_v29 = vpop.permute.xlu1 %839  ;;  %v843_v30 = vmul.f32 %v3107_v40, %v838_v28 }
 0x817   :  { %v844_v32 = vmul.f32 %v3109_v43, %v840_v29 }
 0x818   :  { %v847_v34 = vrot.slane %v843_v30, 2  ;;  %v3217_v35 = vsel %vm172_vm5, %v1546_v31, %v843_v30 }
 0x819   :  { %v848_v36 = vrot.slane %v844_v32, 1  ;;  %v3220_v37 = vsel %vm172_vm5, %v1547_v33, %v844_v32 }
 0x81b   :  { %v849_v38 = vsel %vm570_vm3, %v848_v36, %v847_v34 }
 0x81c   :  { %850 = vrot.lane.b32.xlu0 %v849_v38, %s2881_s2 }
 0x88e   :  { %v851_v39 = vpop.permute.xlu0 %850 }
 0x88f   :  { %2402 = vmatmul.mubr.msk.f32.vlgmr.msra.gmra.mxu1 %vm439_vm4, %v851_v39 }
 0x890   :  { %2416 = vmatpush3.msra.mxu1 %v3008_v4  ;;  %2423 = vmatprep.mubr.msk.f32.mxu1 %vm2879_vm0, %v2878_v0 }
 0x891   :  { %2417 = vmatprep.subr.mxu1 %v2878_v0 }
 0x892   :  { %2418 = vmatpush3.msra.mxu1 %v3012_v5 }
 0x893   :  { %2419 = vmatprep.subr.mxu1 %v2878_v0 }
 0x894   :  { %2420 = vmatpush3.msra.mxu1 %v3018_v6 }
 0x895   :  { %2421 = vmatprep.subr.mxu1 %v2878_v0 }
 0x896   :  { %2422 = vmatpush3.msra.mxu1 %v3022_v7 }
 0x897   :  { %2437 = vmatprep.subr.mxu1 %v2878_v0 }
 0x94f   :  { %v920_v21 = vpop.f32.mrf.mxu1 }
 0x950   :  { %v925_v22 = vrot.slane %v920_v21, 5  ;;  %v926_v40 = vrot.slane %v920_v21, 6 }
 0x951   :  { %v2403_v42 = vpop.f32.mrf.mxu1 }
 0x952   :  { %v929_v43 = vadd.f32 %v925_v22, %v3042_v16  ;;  %v930_v45 = vadd.f32 %v926_v40, %v3039_v12 }
 0x954   :  { %2610 = vtanh.f32 %v929_v43  ;;  %v2177_v48 = vmul.f32 -1.442695, %v929_v43  ;;  %v2178_v49 = vmul.f32 -1.442695, %v930_v45 }
 0x955   :  { %2612 = vtanh.f32 %v930_v45 }
 0x956   :  { %2614 = vpow2.f32 %v2177_v48 }
 0x957   :  { %2616 = vpow2.f32 %v2178_v49 }
 0x961   :  { %v2611_v46 = vpop.eup %2610 }
 0x962   :  { %v2613_v47 = vpop.eup %2612  ;;  %955 = vrot.lane.b32.xlu1 %v2611_v46, %s2880_s1 }
 0x963   :  { %957 = vrot.lane.b32.xlu0 %v2613_v47, %s2880_s1  ;;  %v2615_v50 = vpop.eup %2614 }
 0x964   :  { %v2617_v51 = vpop.eup %2616  ;;  %v937_v52 = vadd.f32 1.0, %v2615_v50 }
 0x965   :  { %v938_v53 = vadd.f32 1.0, %v2617_v51 }
 0x966   :  { %2618 = vrcp.f32 %v937_v52 }
 0x967   :  { %2620 = vrcp.f32 %v938_v53 }
 0x973   :  { %v2619_v54 = vpop.eup %2618 }
 0x974   :  { %v2621_v56 = vpop.eup %2620  ;;  %v951_v1 = vmul.f32 %v2619_v54, %v947_v62 }
 0x975   :  { %v952_v2 = vmul.f32 %v2621_v56, %v948_v63 }
 0x9d4   :  { %v956_v55 = vpop.permute.xlu1 %955 }
 0x9d5   :  { %v958_v57 = vpop.permute.xlu0 %957  ;;  %v961_v60 = vmul.f32 %v2619_v54, %v956_v55 }
 0x9d6   :  { %v962_v61 = vmul.f32 %v2621_v56, %v958_v57 }
 0x9d7   :  { %965 = vrot.lane.b32.xlu1 %v961_v60, %s2881_s2 }
 0x9d8   :  { %967 = vrot.lane.b32.xlu0 %v962_v61, %s2881_s2 }
 0xa49   :  { %v966_v3 = vpop.permute.xlu1 %965 }
 0xa4a   :  { %v968_v8 = vpop.permute.xlu0 %967  ;;  %v3245_v9 = vadd.f32 %v966_v3, %v951_v1 }
 0xa4b   :  { %v3247_v10 = vadd.f32 %v968_v8, %v952_v2 }
 0xa4c   :  { %2622 = vtanh.f32 %v3245_v9  ;;  %v1087_v43 = vrot.slane %v3245_v9, 7 }
 0xa4d   :  { %2624 = vtanh.f32 %v3247_v10  ;;  %v1088_v45 = vrot.slane %v3247_v10, 7 }
 0xa59   :  { %v2623_v11 = vpop.eup %2622 }
 0xa5a   :  { %v2625_v13 = vpop.eup %2624  ;;  %977 = vrot.lane.b32.xlu1 %v2623_v11, %s2880_s1 }
 0xa5b   :  { %979 = vrot.lane.b32.xlu0 %v2625_v13, %s2880_s1 }
 0xacc   :  { %v978_v58 = vpop.permute.xlu1 %977 }
 0xacd   :  { %v980_v59 = vpop.permute.xlu0 %979  ;;  %v983_v14 = vmul.f32 %v2619_v54, %v978_v58 }
 0xace   :  { %v984_v15 = vmul.f32 %v2621_v56, %v980_v59 }
 0xacf   :  { %v987_v17 = vrot.slane %v983_v14, 3  ;;  %v3254_v18 = vsel %vm1550_vm8, %v3217_v35, %v983_v14 }
 0xad0   :  { %v988_v19 = vrot.slane %v984_v15, 2  ;;  %v3257_v20 = vsel %vm1550_vm8, %v3220_v37, %v984_v15 }
 0xad2   :  { %v989_v23 = vsel %vm570_vm3, %v988_v19, %v987_v17 }
 0xad3   :  { %990 = vrot.lane.b32.xlu1 %v989_v23, %s2881_s2 }
 0xb45   :  { %v991_v24 = vpop.permute.xlu1 %990 }
 0xb46   :  { %2413 = vmatmul.mubr.msk.f32.vlgmr.msra.gmra.mxu0 %vm439_vm4, %v991_v24 }
 0xb47   :  { %2427 = vmatpush3.msra.mxu0 %v3008_v4  ;;  %2434 = vmatprep.mubr.msk.f32.mxu0 %vm2879_vm0, %v2878_v0 }
 0xb48   :  { %2428 = vmatprep.subr.mxu0 %v2878_v0 }
 0xb49   :  { %2429 = vmatpush3.msra.mxu0 %v3012_v5 }
 0xb4a   :  { %2430 = vmatprep.subr.mxu0 %v2878_v0 }
 0xb4b   :  { %2431 = vmatpush3.msra.mxu0 %v3018_v6 }
 0xb4c   :  { %2432 = vmatprep.subr.mxu0 %v2878_v0 }
 0xb4d   :  { %2433 = vmatpush3.msra.mxu0 %v3022_v7 }
 0xb4e   :  { %2448 = vmatprep.subr.mxu0 %v2878_v0 }
 0xc06   :  { %v1060_v25 = vpop.f32.mrf.mxu0 }
 0xc07   :  { %v1065_v26 = vrot.slane %v1060_v25, 4  ;;  %v1066_v27 = vrot.slane %v1060_v25, 5 }
 0xc08   :  { %v2414_v28 = vpop.f32.mrf.mxu0 }
 0xc09   :  { %v1069_v29 = vadd.f32 %v1065_v26, %v3042_v16  ;;  %v1070_v30 = vadd.f32 %v1066_v27, %v3039_v12 }
 0xc0b   :  { %2626 = vtanh.f32 %v1069_v29  ;;  %v2180_v33 = vmul.f32 -1.442695, %v1069_v29  ;;  %v2181_v34 = vmul.f32 -1.442695, %v1070_v30 }
 0xc0c   :  { %2628 = vtanh.f32 %v1070_v30 }
 0xc0d   :  { %2630 = vpow2.f32 %v2180_v33 }
 0xc0e   :  { %2632 = vpow2.f32 %v2181_v34 }
 0xc18   :  { %v2627_v31 = vpop.eup %2626 }
 0xc19   :  { %v2629_v32 = vpop.eup %2628  ;;  %1095 = vrot.lane.b32.xlu0 %v2627_v31, %s2880_s1 }
 0xc1a   :  { %1097 = vrot.lane.b32.xlu1 %v2629_v32, %s2880_s1  ;;  %v2631_v35 = vpop.eup %2630 }
 0xc1b   :  { %v2633_v36 = vpop.eup %2632  ;;  %v1077_v37 = vadd.f32 1.0, %v2631_v35 }
 0xc1c   :  { %v1078_v38 = vadd.f32 1.0, %v2633_v36 }
 0xc1d   :  { %2634 = vrcp.f32 %v1077_v37 }
 0xc1e   :  { %2636 = vrcp.f32 %v1078_v38 }
 0xc2a   :  { %v2635_v39 = vpop.eup %2634 }
 0xc2b   :  { %v2637_v21 = vpop.eup %2636  ;;  %v1091_v46 = vmul.f32 %v2635_v39, %v1087_v43 }
 0xc2c   :  { %v1092_v47 = vmul.f32 %v2637_v21, %v1088_v45 }
 0xc8b   :  { %v1096_v44 = vpop.permute.xlu0 %1095 }
 0xc8c   :  { %v1098_v22 = vpop.permute.xlu1 %1097  ;;  %v1101_v40 = vmul.f32 %v2635_v39, %v1096_v44 }
 0xc8d   :  { %v1102_v42 = vmul.f32 %v2637_v21, %v1098_v22 }
 0xc8e   :  { %1105 = vrot.lane.b32.xlu0 %v1101_v40, %s2881_s2 }
 0xc8f   :  { %1107 = vrot.lane.b32.xlu1 %v1102_v42, %s2881_s2 }
 0xd00   :  { %v1106_v48 = vpop.permute.xlu0 %1105 }
 0xd01   :  { %v1108_v49 = vpop.permute.xlu1 %1107  ;;  %v1111_v50 = vadd.f32 %v1106_v48, %v1091_v46 }
 0xd02   :  { %v1112_v51 = vadd.f32 %v1108_v49, %v1092_v47 }
 0xd03   :  { %2638 = vtanh.f32 %v1111_v50  ;;  %v1227_v25 = vrot.slane %v1111_v50, 7 }
 0xd04   :  { %2640 = vtanh.f32 %v1112_v51  ;;  %v1228_v26 = vrot.slane %v1112_v51, 7 }
 0xd10   :  { %v2639_v52 = vpop.eup %2638 }
 0xd11   :  { %v2641_v53 = vpop.eup %2640  ;;  %1117 = vrot.lane.b32.xlu0 %v2639_v52, %s2880_s1 }
 0xd12   :  { %1119 = vrot.lane.b32.xlu1 %v2641_v53, %s2880_s1 }
 0xd83   :  { %v1118_v54 = vpop.permute.xlu0 %1117 }
 0xd84   :  { %v1120_v55 = vpop.permute.xlu1 %1119  ;;  %v1123_v56 = vmul.f32 %v2635_v39, %v1118_v54 }
 0xd85   :  { %v1124_v57 = vmul.f32 %v2637_v21, %v1120_v55 }
 0xd86   :  { %v1127_v60 = vrot.slane %v1123_v56, 4  ;;  %v3284_v61 = vsel %vm356_vm1, %v3254_v18, %v1123_v56 }
 0xd87   :  { %v1128_v62 = vrot.slane %v1124_v57, 3  ;;  %v3288_v63 = vsel %vm356_vm1, %v3257_v20, %v1124_v57 }
 0xd89   :  { %v1129_v1 = vsel %vm570_vm3, %v1128_v62, %v1127_v60 }
 0xd8a   :  { %1130 = vrot.lane.b32.xlu0 %v1129_v1, %s2881_s2 }
 0xdfc   :  { %v1131_v2 = vpop.permute.xlu0 %1130 }
 0xdfd   :  { %2424 = vmatmul.mubr.msk.f32.vlgmr.msra.gmra.mxu1 %vm439_vm4, %v1131_v2 }
 0xdfe   :  { %2438 = vmatpush3.msra.mxu1 %v3008_v4  ;;  %2445 = vmatprep.mubr.msk.f32.mxu1 %vm2879_vm0, %v2878_v0 }
 0xdff   :  { %2439 = vmatprep.subr.mxu1 %v2878_v0 }
 0xe00   :  { %2440 = vmatpush3.msra.mxu1 %v3012_v5 }
 0xe01   :  { %2441 = vmatprep.subr.mxu1 %v2878_v0 }
 0xe02   :  { %2442 = vmatpush3.msra.mxu1 %v3018_v6 }
 0xe03   :  { %2443 = vmatprep.subr.mxu1 %v2878_v0 }
 0xe04   :  { %2444 = vmatpush3.msra.mxu1 %v3022_v7 }
 0xe05   :  { %2459 = vmatprep.subr.mxu1 %v2878_v0 }
 0xebd   :  { %v1200_v3 = vpop.f32.mrf.mxu1 }
 0xebe   :  { %v1205_v8 = vrot.slane %v1200_v3, 3  ;;  %v1206_v4 = vrot.slane %v1200_v3, 4 }
 0xebf   :  { %v2425_v9 = vpop.f32.mrf.mxu1 }
 0xec0   :  { %v1209_v10 = vadd.f32 %v1205_v8, %v3042_v16  ;;  %v1210_v11 = vadd.f32 %v1206_v4, %v3039_v12 }
 0xec2   :  { %2642 = vtanh.f32 %v1209_v10  ;;  %v2183_v6 = vmul.f32 -1.442695, %v1209_v10  ;;  %v2184_v7 = vmul.f32 -1.442695, %v1210_v11 }
 0xec3   :  { %2644 = vtanh.f32 %v1210_v11 }
 0xec4   :  { %2646 = vpow2.f32 %v2183_v6 }
 0xec5   :  { %2648 = vpow2.f32 %v2184_v7 }
 0xecf   :  { %v2643_v5 = vpop.eup %2642 }
 0xed0   :  { %v2645_v13 = vpop.eup %2644  ;;  %1235 = vrot.lane.b32.xlu1 %v2643_v5, %s2880_s1 }
 0xed1   :  { %1237 = vrot.lane.b32.xlu0 %v2645_v13, %s2880_s1  ;;  %v2647_v58 = vpop.eup %2646 }
 0xed2   :  { %v2649_v59 = vpop.eup %2648  ;;  %v1217_v14 = vadd.f32 1.0, %v2647_v58 }
 0xed3   :  { %v1218_v15 = vadd.f32 1.0, %v2649_v59 }
 0xed4   :  { %2650 = vrcp.f32 %v1217_v14 }
 0xed5   :  { %2652 = vrcp.f32 %v1218_v15 }
 0xee1   :  { %v2651_v17 = vpop.eup %2650 }
 0xee2   :  { %v2653_v19 = vpop.eup %2652  ;;  %v1231_v27 = vmul.f32 %v2651_v17, %v1227_v25 }
 0xee3   :  { %v1232_v28 = vmul.f32 %v2653_v19, %v1228_v26 }
 0xf42   :  { %v1236_v18 = vpop.permute.xlu1 %1235 }
 0xf43   :  { %v1238_v20 = vpop.permute.xlu0 %1237  ;;  %v1241_v23 = vmul.f32 %v2651_v17, %v1236_v18 }
 0xf44   :  { %v1242_v24 = vmul.f32 %v2653_v19, %v1238_v20 }
 0xf45   :  { %1245 = vrot.lane.b32.xlu1 %v1241_v23, %s2881_s2 }
 0xf46   :  { %1247 = vrot.lane.b32.xlu0 %v1242_v24, %s2881_s2 }
 0xfb7   :  { %v1246_v29 = vpop.permute.xlu1 %1245 }
 0xfb8   :  { %v1248_v30 = vpop.permute.xlu0 %1247  ;;  %v1251_v31 = vadd.f32 %v1246_v29, %v1231_v27 }
 0xfb9   :  { %v1252_v32 = vadd.f32 %v1248_v30, %v1232_v28 }
 0xfba   :  { %2654 = vtanh.f32 %v1251_v31  ;;  %v1367_v3 = vrot.slane %v1251_v31, 7 }
 0xfbb   :  { %2656 = vtanh.f32 %v1252_v32  ;;  %v1368_v8 = vrot.slane %v1252_v32, 7 }
 0xfc7   :  { %v2655_v33 = vpop.eup %2654 }
 0xfc8   :  { %v2657_v34 = vpop.eup %2656  ;;  %1257 = vrot.lane.b32.xlu1 %v2655_v33, %s2880_s1 }
 0xfc9   :  { %1259 = vrot.lane.b32.xlu0 %v2657_v34, %s2880_s1 }
0x103a   :  { %v1258_v35 = vpop.permute.xlu1 %1257 }
0x103b   :  { %v1260_v36 = vpop.permute.xlu0 %1259  ;;  %v1263_v37 = vmul.f32 %v2651_v17, %v1258_v35 }
0x103c   :  { %v1264_v38 = vmul.f32 %v2653_v19, %v1260_v36 }
0x103d   :  { %v1267_v39 = vrot.slane %v1263_v37, 5  ;;  %v1556_v44 = vsel %vm1555_vm9, %v3284_v61, %v1263_v37 }
0x103e   :  { %v1268_v21 = vrot.slane %v1264_v38, 4  ;;  %v1557_v22 = vsel %vm1555_vm9, %v3288_v63, %v1264_v38 }
0x1040   :  { %v1269_v40 = vsel %vm570_vm3, %v1268_v21, %v1267_v39 }
0x1041   :  { %1270 = vrot.lane.b32.xlu1 %v1269_v40, %s2881_s2 }
0x10b3   :  { %v1271_v42 = vpop.permute.xlu1 %1270 }
0x10b4   :  { %2435 = vmatmul.mubr.msk.f32.vlgmr.msra.gmra.mxu0 %vm439_vm4, %v1271_v42 }
0x10b5   :  { %2456 = vmatprep.mubr.msk.f32.mxu0 %vm2879_vm0, %v2878_v0 }
0x1174   :  { %v1340_v43 = vpop.f32.mrf.mxu0 }
0x1175   :  { %v1345_v45 = vrot.slane %v1340_v43, 2  ;;  %v1346_v46 = vrot.slane %v1340_v43, 3 }
0x1176   :  { %v2436_v47 = vpop.f32.mrf.mxu0 }
0x1177   :  { %v1349_v48 = vadd.f32 %v1345_v45, %v3042_v16  ;;  %v1350_v49 = vadd.f32 %v1346_v46, %v3039_v12 }
0x1179   :  { %2658 = vtanh.f32 %v1349_v48  ;;  %v2186_v52 = vmul.f32 -1.442695, %v1349_v48  ;;  %v2187_v53 = vmul.f32 -1.442695, %v1350_v49 }
0x117a   :  { %2660 = vtanh.f32 %v1350_v49 }
0x117b   :  { %2662 = vpow2.f32 %v2186_v52  ;;  %v2191_v52 = vld [vmem:[#allocation13 + $0x8] ss:$0 sm:$0xff] }
0x117c   :  { %2664 = vpow2.f32 %v2187_v53  ;;  %v2883_v53 = vmov 0  }
0x117d   :  { %2560 = vset.pattern.permute.xlu0 %v2883_v53  ;;  %2561 = vset.pattern.permute.xlu1 %v2883_v53 }
0x1186   :  { %v2659_v50 = vpop.eup %2658 }
0x1187   :  { %v2661_v51 = vpop.eup %2660  ;;  %1375 = vrot.lane.b32.xlu0 %v2659_v50, %s2880_s1 }
0x1188   :  { %1377 = vrot.lane.b32.xlu1 %v2661_v51, %s2880_s1  ;;  %v2663_v54 = vpop.eup %2662 }
0x1189   :  { %v2665_v55 = vpop.eup %2664  ;;  %v1357_v56 = vadd.f32 1.0, %v2663_v54 }
0x118a   :  { %v1358_v57 = vadd.f32 1.0, %v2665_v55 }
0x118b   :  { %2666 = vrcp.f32 %v1357_v56 }
0x118c   :  { %2668 = vrcp.f32 %v1358_v57 }
0x1198   :  { %v2667_v60 = vpop.eup %2666 }
0x1199   :  { %v2669_v62 = vpop.eup %2668  ;;  %v1371_v4 = vmul.f32 %v2667_v60, %v1367_v3 }
0x119a   :  { %v1372_v9 = vmul.f32 %v2669_v62, %v1368_v8 }
0x11f9   :  { %v1376_v61 = vpop.permute.xlu0 %1375 }
0x11fa   :  { %v1378_v63 = vpop.permute.xlu1 %1377  ;;  %v1381_v1 = vmul.f32 %v2667_v60, %v1376_v61 }
0x11fb   :  { %v1382_v2 = vmul.f32 %v2669_v62, %v1378_v63 }
0x11fc   :  { %1385 = vrot.lane.b32.xlu0 %v1381_v1, %s2881_s2 }
0x11fd   :  { %1387 = vrot.lane.b32.xlu1 %v1382_v2, %s2881_s2 }
0x126e   :  { %v1386_v10 = vpop.permute.xlu0 %1385 }
0x126f   :  { %v1388_v11 = vpop.permute.xlu1 %1387  ;;  %v1391_v5 = vadd.f32 %v1386_v10, %v1371_v4  ;;  %v1601_v10 = vlaneseq }
0x1270   :  { %v1392_v13 = vadd.f32 %v1388_v11, %v1372_v9  ;;  %v2192_v9 = vld [vmem:[#allocation13 + $0x9] ss:$0 sm:$0xff] }
0x1271   :  { %2670 = vtanh.f32 %v1391_v5  ;;  %v1507_v40 = vrot.slane %v1391_v5, 7  ;;  %v1602_v11 = vand.u32 127, %v1601_v10  ;;  %v1604_v5 = vshrl.u32 %v1601_v10, 7  ;;  %v1805_v10 = vld [vmem:[#allocation7 + $0x70] sm:$0xff] }
0x1272   :  { %2672 = vtanh.f32 %v1392_v13  ;;  %v1508_v42 = vrot.slane %v1392_v13, 7 }
0x127e   :  { %v2671_v6 = vpop.eup %2670 }
0x127f   :  { %v2673_v7 = vpop.eup %2672  ;;  %1397 = vrot.lane.b32.xlu0 %v2671_v6, %s2880_s1  ;;  %v1605_v6 = vsub.s32 %v1602_v11, %v1604_v5  ;;  %v1804_v11 = vld [vmem:[#allocation7 + $0x68] sm:$0xff] }
0x1280   :  { %1399 = vrot.lane.b32.xlu1 %v2673_v7, %s2880_s1 }
0x12f1   :  { %v1398_v58 = vpop.permute.xlu0 %1397 }
0x12f2   :  { %v1400_v59 = vpop.permute.xlu1 %1399  ;;  %v1403_v14 = vmul.f32 %v2667_v60, %v1398_v58 }
0x12f3   :  { %v1404_v15 = vmul.f32 %v2669_v62, %v1400_v59 }
0x12f4   :  { %v1407_v17 = vrot.slane %v1403_v14, 6  ;;  %v3326_v18 = vsel %vm1558_vm10, %v1556_v44, %v1403_v14 }
0x12f5   :  { %v1408_v19 = vrot.slane %v1404_v15, 5  ;;  %v3328_v20 = vsel %vm1558_vm10, %v1557_v22, %v1404_v15 }
0x12f7   :  { %v1409_v23 = vsel %vm570_vm3, %v1408_v19, %v1407_v17 }
0x12f8   :  { %1410 = vrot.lane.b32.xlu0 %v1409_v23, %s2881_s2  ;;  %v1624_v23 = vsub.s32 1, %v1604_v5 }
0x136a   :  { %v1411_v24 = vpop.permute.xlu0 %1410 }
0x136b   :  { %2446 = vmatmul.mubr.msk.f32.vlgmr.msra.gmra.mxu1 %vm439_vm4, %v1411_v24 }
0x136c   :  { %2491 = vmatprep.mubr.msk.f32.mxu1 %vm2879_vm0, %v2878_v0 }
0x142b   :  { %v1480_v25 = vpop.f32.mrf.mxu1 }
0x142c   :  { %v1485_v26 = vrot.slane %v1480_v25, 1  ;;  %v1486_v27 = vrot.slane %v1480_v25, 2 }
0x142d   :  { %v2447_v28 = vpop.f32.mrf.mxu1 }
0x142e   :  { %v1489_v29 = vadd.f32 %v1485_v26, %v3042_v16  ;;  %v1490_v30 = vadd.f32 %v1486_v27, %v3039_v12 }
0x1430   :  { %2674 = vtanh.f32 %v1489_v29  ;;  %v2189_v33 = vmul.f32 -1.442695, %v1489_v29  ;;  %v2190_v34 = vmul.f32 -1.442695, %v1490_v30 }
0x1431   :  { %2676 = vtanh.f32 %v1490_v30 }
0x1432   :  { %2678 = vpow2.f32 %v2189_v33 }
0x1433   :  { %2680 = vpow2.f32 %v2190_v34 }
0x143d   :  { %v2675_v31 = vpop.eup %2674 }
0x143e   :  { %v2677_v32 = vpop.eup %2676  ;;  %1515 = vrot.lane.b32.xlu1 %v2675_v31, %s2880_s1 }
0x143f   :  { %1517 = vrot.lane.b32.xlu0 %v2677_v32, %s2880_s1  ;;  %v2679_v35 = vpop.eup %2678 }
0x1440   :  { %v2681_v36 = vpop.eup %2680  ;;  %v1497_v37 = vadd.f32 1.0, %v2679_v35 }
0x1441   :  { %v1498_v38 = vadd.f32 1.0, %v2681_v36 }
0x1442   :  { %2682 = vrcp.f32 %v1497_v37 }
0x1443   :  { %2684 = vrcp.f32 %v1498_v38 }
0x144f   :  { %v2683_v16 = vpop.eup %2682 }
0x1450   :  { %v2685_v39 = vpop.eup %2684  ;;  %v1511_v43 = vmul.f32 %v2683_v16, %v1507_v40 }
0x1451   :  { %v1512_v45 = vmul.f32 %v2685_v39, %v1508_v42  ;;  %v1700_v42 = vld [vmem:[#allocation6 + $0x18] sm:$0xff] }
0x1452   :  { %2449 = vmatpush3.msra.mxu0 %v1700_v42  ;;  %v1975_v42 = vld [vmem:[#allocation10 + $0x18] sm:$0xff] }
0x1453   :  { %2450 = vmatprep.subr.mxu0 %v2878_v0 }
0x14b0   :  { %v1516_v12 = vpop.permute.xlu1 %1515 }
0x14b1   :  { %v1518_v44 = vpop.permute.xlu0 %1517  ;;  %v1521_v21 = vmul.f32 %v2683_v16, %v1516_v12 }
0x14b2   :  { %v1522_v22 = vmul.f32 %v2685_v39, %v1518_v44 }
0x14b3   :  { %1525 = vrot.lane.b32.xlu1 %v1521_v21, %s2881_s2 }
0x14b4   :  { %1527 = vrot.lane.b32.xlu0 %v1522_v22, %s2881_s2 }
0x1525   :  { %v1526_v46 = vpop.permute.xlu1 %1525 }
0x1526   :  { %v1528_v47 = vpop.permute.xlu0 %1527  ;;  %v1531_v48 = vadd.f32 %v1526_v46, %v1511_v43  ;;  %v1699_v43 = vld [vmem:[#allocation6 + $0x10] sm:$0xff]  ;;  %v1697_v46 = vld [vmem:[#allocation6] sm:$0xff] }
0x1527   :  { %v1532_v49 = vadd.f32 %v1528_v47, %v1512_v45  ;;  %v1698_v45 = vld [vmem:[#allocation6 + $0x8] sm:$0xff]  ;;  %2451 = vmatpush3.msra.mxu0 %v1699_v43  ;;  %v1974_v43 = vld [vmem:[#allocation10 + $0x10] sm:$0xff] }
0x1528   :  { %2686 = vtanh.f32 %v1531_v48  ;;  %2452 = vmatprep.subr.mxu0 %v2878_v0 }
0x1529   :  { %2688 = vtanh.f32 %v1532_v49  ;;  %2453 = vmatpush3.msra.mxu0 %v1698_v45  ;;  %v1973_v45 = vld [vmem:[#allocation10 + $0x8] sm:$0xff] }
0x152a   :  { %2454 = vmatprep.subr.mxu0 %v2878_v0 }
0x152b   :  { %2455 = vmatpush3.msra.mxu0 %v1697_v46  ;;  %v1972_v46 = vld [vmem:[#allocation10] sm:$0xff] }
0x152c   :  { %2494 = vmatprep.subr.mxu0 %v2878_v0 }
0x1535   :  { %v2687_v50 = vpop.eup %2686 }
0x1536   :  { %v2689_v51 = vpop.eup %2688  ;;  %1537 = vrot.lane.b32.xlu1 %v2687_v50, %s2880_s1 }
0x1537   :  { %1539 = vrot.lane.b32.xlu0 %v2689_v51, %s2880_s1 }
0x153a   :  { %1569 = vrot.lane.b32.xlu1 %v2191_v52, %s2882_s5 }
0x15a8   :  { %v1538_v54 = vpop.permute.xlu1 %1537 }
0x15a9   :  { %v1540_v55 = vpop.permute.xlu0 %1539  ;;  %v1543_v56 = vmul.f32 %v2683_v16, %v1538_v54 }
0x15aa   :  { %v1544_v57 = vmul.f32 %v2685_v39, %v1540_v55 }
0x15ab   :  { %v3344_v60 = vsel %vm1561_vm11, %v3326_v18, %v1543_v56 }
0x15ac   :  { %v3347_v61 = vsel %vm1561_vm11, %v3328_v20, %v1544_v57  ;;  %v1570_v62 = vpop.permute.xlu1 %1569  ;;  %v1620_v20 = vsub.s32 0, %v1604_v5  ;;  %v1803_v5 = vld [vmem:[#allocation7 + $0x60] sm:$0xff] }
0x15ad   :  { %v1572_v63 = vmul.f32 %v1570_v62, %v3344_v60  ;;  %v1573_v1 = vmul.f32 %v1570_v62, %v3347_v61 }
0x15af   :  { %1578 = vrot.lane.b32.xlu1 %v1573_v1, %s2881_s2  ;;  %1576 = vrot.lane.b32.xlu0 %v1572_v63, %s2881_s2 }
0x1621   :  { %v1579_v2 = vpop.permute.xlu1 %1578  ;;  %v1577_v3 = vpop.permute.xlu0 %1576 }
0x1622   :  { %v1585_v8 = vsel %vm439_vm4, %v1579_v2, 0.0  ;;  %v1582_v4 = vsel %vm439_vm4, %v1577_v3, 0.0 }
0x1623   :  { %1586 = vadd.xlane.f32.xlu1 %v1585_v8  ;;  %1583 = vadd.xlane.f32.xlu0 %v1582_v4 }
0x1639   :  { %1594 = vperm.xlu0 %2560, %v2192_v9  }
0x16ac   :  { %v1584_v13 = vpop.xlane.xlu0 %1583  ;;  %v1587_v7 = vpop.xlane.xlu1 %1586 }
0x16b4   :  { %v1595_v58 = vpop.permute.xlu0 %1594 }
0x16b5   :  { %v1597_v59 = vadd.f32 %v1595_v58, %v1584_v13  ;;  %v1598_v14 = vadd.f32 %v1595_v58, %v1587_v7  ;;  %v1802_v13 = vld [vmem:[#allocation7 + $0x58] sm:$0xff]  ;;  %v1800_v7 = vld [vmem:[#allocation7 + $0x48] sm:$0xff]  ;;  %v1799_v58 = vld [vmem:[#allocation7 + $0x40] sm:$0xff] }
0x16b7   :  { %v1606_v15 = vrot.slane %v1597_v59, %v1605_v6  ;;  %v1610_v17 = vrot.slane %v1598_v14, %v1605_v6 }
0x16b9   :  { %v1611_v18 = vsel %vm570_vm3, %v1610_v17, %v1606_v15  ;;  %v1796_v15 = vld [vmem:[#allocation7 + $0x28] sm:$0xff]  ;;  %v1795_v17 = vld [vmem:[#allocation7 + $0x20] sm:$0xff] }
0x16ba   :  { %v1614_v19 = vsel %vm1613_vm12, %v1611_v18, -inf  ;;  %v1794_v18 = vld [vmem:[#allocation7 + $0x18] sm:$0xff] }
0x16bb   :  { %1615 = vmax.xlane.f32.xlu1 %v1614_v19  ;;  %v1793_v19 = vld [vmem:[#allocation7 + $0x10] sm:$0xff] }
0x1744   :  { %v1616_v24 = vpop.xlane.xlu1 %1615 }
0x1745   :  { %v1621_v25 = vrot.slane %v1616_v24, %v1620_v20  ;;  %v1625_v26 = vrot.slane %v1616_v24, %v1624_v23  ;;  %v1891_v24 = vld [vmem:[#allocation9 + $0x38] sm:$0xff] }
0x1747   :  { %v1628_v27 = vsub.f32 %v1597_v59, %v1621_v25  ;;  %v1629_v28 = vsub.f32 %v1598_v14, %v1625_v26  ;;  %v1798_v59 = vld [vmem:[#allocation7 + $0x38] sm:$0xff]  ;;  %v1797_v14 = vld [vmem:[#allocation7 + $0x30] sm:$0xff]  ;;  %v1889_v26 = vld [vmem:[#allocation9 + $0x28] sm:$0xff] }
0x1748   :  { %v1890_v25 = vld [vmem:[#allocation9 + $0x30] sm:$0xff] }
0x1749   :  { %v1630_v29 = vmul.f32 1.442695, %v1628_v27  ;;  %v1632_v30 = vmul.f32 1.442695, %v1629_v28  ;;  %v1888_v27 = vld [vmem:[#allocation9 + $0x20] sm:$0xff] }
0x174a   :  { %v2193_v28 = vld [vmem:[#allocation13 + $0x3] ss:$0 sm:$0xff] }
0x174b   :  { %2690 = vpow2.f32 %v1630_v29  ;;  %v1887_v29 = vld [vmem:[#allocation9 + $0x18] sm:$0xff] }
0x174c   :  { %2692 = vpow2.f32 %v1632_v30 }
0x1758   :  { %v2691_v31 = vpop.eup %2690 }
0x1759   :  { %1637 = vperm.xlu1 %2561, %v2691_v31   ;;  %v2693_v32 = vpop.eup %2692 }
0x175d   :  { %1640 = vperm.xlu1 %2561, %v2693_v32  }
0x17d4   :  { %v1638_v33 = vpop.permute.xlu1 %1637 }
0x17d5   :  { %v1645_v35 = vrot.slane %v1638_v33, %v1605_v6 }
0x17d8   :  { %v1641_v34 = vpop.permute.xlu1 %1640 }
0x17d9   :  { %v1649_v36 = vrot.slane %v1641_v34, %v1605_v6  ;;  %v1801_v6 = vld [vmem:[#allocation7 + $0x50] sm:$0xff]  ;;  %v2163_v34 = vld [vmem:[#allocation13 + $0x2] ss:$0 sm:$0xff] }
0x17db   :  { %v1650_v37 = vsel %vm570_vm3, %v1649_v36, %v1645_v35  ;;  %v336_v35 = vadd.f32 %v2163_v34, %v3235_v41 }
0x17dc   :  { %v1652_v38 = vsel %vm1613_vm12, %v1650_v37, 0.0 }
0x17dd   :  { %1653 = vadd.xlane.f32.xlu1 %v1652_v38  ;;  %v339_v36 = vmax.f32 %v336_v35, 0.0 }
0x1866   :  { %v1654_v16 = vpop.xlane.xlu1 %1653 }
0x1867   :  { %v1659_v12 = vrot.slane %v1654_v16, %v1620_v20  ;;  %v1663_v39 = vrot.slane %v1654_v16, %v1624_v23  ;;  %v1792_v20 = vld [vmem:[#allocation7 + $0x8] sm:$0xff]  ;;  %v1791_v23 = vld [vmem:[#allocation7] sm:$0xff]  ;;  %v1886_v16 = vld [vmem:[#allocation9 + $0x10] sm:$0xff] }
0x1869   :  { %2694 = vrcp.f32 %v1659_v12  ;;  %v1885_v12 = vld [vmem:[#allocation9 + $0x8] sm:$0xff] }
0x186a   :  { %2696 = vrcp.f32 %v1663_v39  ;;  %v1884_v39 = vld [vmem:[#allocation9] sm:$0xff] }
0x1876   :  { %v2695_v44 = vpop.eup %2694 }
0x1877   :  { %v1667_v21 = vmul.f32 %v2695_v44, %v2691_v31  ;;  %v2697_v22 = vpop.eup %2696  ;;  %v2195_v44 = vld [vmem:[#allocation13 + $0x4] ss:$0 sm:$0xff] }
0x1878   :  { %v1669_v40 = vmul.f32 %v2697_v22, %v2693_v32 }
0x1879   :  { %1672 = vperm.xlu0 %2560, %v1667_v21  }
0x187d   :  { %1677 = vperm.xlu0 %2560, %v1669_v40  }
0x18f4   :  { %v1673_v47 = vpop.permute.xlu0 %1672 }
0x18f5   :  { %v1680_v48 = vmul.f32 %v1673_v47, %v3344_v60  ;;  %v2196_v47 = vld [vmem:[#allocation13 + $0x5] ss:$0 sm:$0xff] }
0x18f7   :  { %v1683_v49 = vsel %vm1682_vm13, %v1680_v48, 0.0 }
0x18f8   :  { %v1684_v50 = vrot.slane %v1683_v49, 4  ;;  %v1678_v51 = vpop.permute.xlu0 %1677 }
0x18f9   :  { %v1681_v52 = vmul.f32 %v1678_v51, %v3347_v61  ;;  %v1806_v61 = vld [vmem:[#allocation7 + $0x78] sm:$0xff] }
0x18fa   :  { %v1685_v53 = vadd.f32 %v1684_v50, %v1683_v49  ;;  %2460 = vmatpush3.msra.mxu1 %v1806_v61  ;;  %v2198_v61 = vld [vmem:[#allocation13 + $0x6] ss:$0 sm:$0xff] }
0x18fb   :  { %v1690_v54 = vsel %vm1682_vm13, %v1681_v52, 0.0  ;;  %2461 = vmatprep.subr.mxu1 %v2878_v0  ;;  %v2062_v52 = vld [vmem:[#allocation12 + $0x38] sm:$0xff] }
0x18fc   :  { %v1686_v55 = vrot.slane %v1685_v53, 2  ;;  %v1691_v56 = vrot.slane %v1690_v54, 4  ;;  %2462 = vmatpush3.msra.mxu1 %v1805_v10 }
0x18fd   :  { %2463 = vmatprep.subr.mxu1 %v2878_v0 }
0x18fe   :  { %v1687_v57 = vadd.f32 %v1686_v55, %v1685_v53  ;;  %v1692_v62 = vadd.f32 %v1691_v56, %v1690_v54  ;;  %2464 = vmatpush3.msra.mxu1 %v1804_v11  ;;  %v2061_v53 = vld [vmem:[#allocation12 + $0x30] sm:$0xff]  ;;  %v2060_v54 = vld [vmem:[#allocation12 + $0x28] sm:$0xff]  ;;  %v2059_v55 = vld [vmem:[#allocation12 + $0x20] sm:$0xff] }
0x18ff   :  { %2465 = vmatprep.subr.mxu1 %v2878_v0  ;;  %v2058_v56 = vld [vmem:[#allocation12 + $0x18] sm:$0xff] }
0x1900   :  { %v1693_v63 = vrot.slane %v1692_v62, 2  ;;  %v1688_v1 = vrot.slane %v1687_v57, 1  ;;  %2466 = vmatpush3.msra.mxu1 %v1803_v5 }
0x1901   :  { %2467 = vmatprep.subr.mxu1 %v2878_v0 }
0x1902   :  { %v1694_v2 = vadd.f32 %v1693_v63, %v1692_v62  ;;  %v1689_v8 = vadd.f32 %v1688_v1, %v1687_v57  ;;  %2468 = vmatpush3.msra.mxu1 %v1802_v13  ;;  %v2057_v57 = vld [vmem:[#allocation12 + $0x10] sm:$0xff]  ;;  %v2056_v62 = vld [vmem:[#allocation12 + $0x8] sm:$0xff]  ;;  %v2055_v63 = vld [vmem:[#allocation12] sm:$0xff] }
0x1903   :  { %2469 = vmatprep.subr.mxu1 %v2878_v0 }
0x1904   :  { %v1695_v3 = vrot.slane %v1694_v2, 1  ;;  %2470 = vmatpush3.msra.mxu1 %v1801_v6 }
0x1905   :  { %2471 = vmatprep.subr.mxu1 %v2878_v0 }
0x1906   :  { %v1696_v4 = vadd.f32 %v1695_v3, %v1694_v2  ;;  %2472 = vmatpush3.msra.mxu1 %v1800_v7 }
0x1907   :  { %2473 = vmatprep.subr.mxu1 %v2878_v0 }
0x1908   :  { %v1709_v9 = vsel %vm570_vm3, %v1696_v4, %v1689_v8  ;;  %2474 = vmatpush3.msra.mxu1 %v1799_v58  ;;  %v2200_v8 = vld [vmem:[#allocation13 + $0x7] ss:$0 sm:$0xff] }
0x1909   :  { %1710 = vrot.lane.b32.xlu0 %v1709_v9, %s2881_s2  ;;  %2475 = vmatprep.subr.mxu1 %v2878_v0 }
0x190a   :  { %2476 = vmatpush3.msra.mxu1 %v1798_v59 }
0x190b   :  { %2477 = vmatprep.subr.mxu1 %v2878_v0 }
0x190c   :  { %2478 = vmatpush3.msra.mxu1 %v1797_v14 }
0x190d   :  { %2479 = vmatprep.subr.mxu1 %v2878_v0 }
0x190e   :  { %2480 = vmatpush3.msra.mxu1 %v1796_v15 }
0x190f   :  { %2481 = vmatprep.subr.mxu1 %v2878_v0 }
0x1910   :  { %2482 = vmatpush3.msra.mxu1 %v1795_v17 }
0x1911   :  { %2483 = vmatprep.subr.mxu1 %v2878_v0 }
0x1912   :  { %2484 = vmatpush3.msra.mxu1 %v1794_v18 }
0x1913   :  { %2485 = vmatprep.subr.mxu1 %v2878_v0 }
0x1914   :  { %2486 = vmatpush3.msra.mxu1 %v1793_v19 }
0x1915   :  { %2487 = vmatprep.subr.mxu1 %v2878_v0 }
0x1916   :  { %2488 = vmatpush3.msra.mxu1 %v1792_v20 }
0x1917   :  { %2489 = vmatprep.subr.mxu1 %v2878_v0 }
0x1918   :  { %2490 = vmatpush3.msra.mxu1 %v1791_v23 }
0x197b   :  { %v1711_v60 = vpop.permute.xlu0 %1710 }
0x197c   :  { %2457 = vmatmul.mubr.msk.f32.vlgmr.msra.gmra.mxu0 %vm439_vm4, %v1711_v60 }
0x197d   :  { %2510 = vmatprep.mubr.msk.f32.mxu0 %vm2879_vm0, %v2878_v0  ;;  %2495 = vmatpush3.msra.mxu0 %v1891_v24 }
0x197e   :  { %2496 = vmatprep.subr.mxu0 %v2878_v0 }
0x197f   :  { %2497 = vmatpush3.msra.mxu0 %v1890_v25 }
0x1980   :  { %2498 = vmatprep.subr.mxu0 %v2878_v0 }
0x1981   :  { %2499 = vmatpush3.msra.mxu0 %v1889_v26 }
0x1982   :  { %2500 = vmatprep.subr.mxu0 %v2878_v0 }
0x1983   :  { %2501 = vmatpush3.msra.mxu0 %v1888_v27 }
0x1984   :  { %2502 = vmatprep.subr.mxu0 %v2878_v0 }
0x1985   :  { %2503 = vmatpush3.msra.mxu0 %v1887_v29 }
0x1986   :  { %2504 = vmatprep.subr.mxu0 %v2878_v0 }
0x1987   :  { %2505 = vmatpush3.msra.mxu0 %v1886_v16 }
0x1988   :  { %2506 = vmatprep.subr.mxu0 %v2878_v0 }
0x1989   :  { %2507 = vmatpush3.msra.mxu0 %v1885_v12 }
0x198a   :  { %2508 = vmatprep.subr.mxu0 %v2878_v0 }
0x198b   :  { %2509 = vmatpush3.msra.mxu0 %v1884_v39 }
0x198c   :  { %2513 = vmatprep.subr.mxu0 %v2878_v0 }
0x1a3c   :  { %v1780_v30 = vpop.f32.mrf.mxu0 }
0x1a3d   :  { %v1781_v31 = vadd.f32 %v2193_v28, %v1780_v30 }
0x1a3e   :  { %v2458_v32 = vpop.f32.mrf.mxu0 }
0x1a3f   :  { %v1784_v33 = vmax.f32 %v1781_v31, 0.0 }
0x1a41   :  { %1786 = vrot.lane.b32.xlu0 %v1784_v33, %s2880_s1 }
0x1ab3   :  { %v1787_v37 = vpop.permute.xlu0 %1786 }
0x1ab4   :  { %v1790_v38 = vsel %vm1789_vm14, %v339_v36, %v1787_v37 }
0x1ab5   :  { %2492 = vmatmul.mubr.f32.vlgmr.msra.gmra.mxu1 %v1790_v38 }
0x1b75   :  { %v1879_v41 = vpop.f32.mrf.mxu1 }
0x1b76   :  { %v1880_v21 = vadd.f32 %v2195_v44, %v1879_v41 }
0x1b77   :  { %v2493_v22 = vpop.f32.mrf.mxu1 }
0x1b78   :  { %v1883_v40 = vmax.f32 %v1880_v21, 0.0 }
0x1b7a   :  { %2069 = vrot.lane.b32.xlu0 %v1883_v40, %s2880_s1  ;;  %2511 = vmatmul.mubr.msk.f32.vlgmr.msra.gmra.mxu0 %vm1789_vm14, %v1883_v40  ;;  %s2884_s1 = smov 6  }
0x1b7b   :  { %2514 = vmatpush3.msra.mxu0 %v1975_v42  ;;  %2521 = vmatprep.mubr.msk.f32.mxu0 %vm2879_vm0, %v2878_v0 }
0x1b7c   :  { %2515 = vmatprep.subr.mxu0 %v2878_v0 }
0x1b7d   :  { %2516 = vmatpush3.msra.mxu0 %v1974_v43 }
0x1b7e   :  { %2517 = vmatprep.subr.mxu0 %v2878_v0 }
0x1b7f   :  { %2518 = vmatpush3.msra.mxu0 %v1973_v45 }
0x1b80   :  { %2519 = vmatprep.subr.mxu0 %v2878_v0 }
0x1b81   :  { %2520 = vmatpush3.msra.mxu0 %v1972_v46 }
0x1b82   :  { %2524 = vmatprep.subr.mxu0 %v2878_v0 }
0x1bec   :  { %v2070_v1 = vpop.permute.xlu0 %2069 }
0x1c3a   :  { %v1967_v48 = vpop.f32.mrf.mxu0 }
0x1c3b   :  { %v1968_v49 = vadd.f32 %v2196_v47, %v1967_v48 }
0x1c3c   :  { %v2512_v50 = vpop.f32.mrf.mxu0 }
0x1c3d   :  { %v1971_v51 = vmax.f32 %v1968_v49, 0.0 }
0x1c3f   :  { %2522 = vmatmul.mubr.msk.f32.vlgmr.msra.gmra.mxu0 %vm439_vm4, %v1971_v51 }
0x1c40   :  { %2525 = vmatpush3.msra.mxu0 %v2062_v52  ;;  %2540 = vmatprep.mubr.msk.f32.mxu0 %vm2879_vm0, %v2878_v0  ;;  %vm2149_vm0 = vcmask 336896  }
0x1c41   :  { %2526 = vmatprep.subr.mxu0 %v2878_v0 }
0x1c42   :  { %2527 = vmatpush3.msra.mxu0 %v2061_v53 }
0x1c43   :  { %2528 = vmatprep.subr.mxu0 %v2878_v0 }
0x1c44   :  { %2529 = vmatpush3.msra.mxu0 %v2060_v54 }
0x1c45   :  { %2530 = vmatprep.subr.mxu0 %v2878_v0 }
0x1c46   :  { %2531 = vmatpush3.msra.mxu0 %v2059_v55 }
0x1c47   :  { %2532 = vmatprep.subr.mxu0 %v2878_v0 }
0x1c48   :  { %2533 = vmatpush3.msra.mxu0 %v2058_v56 }
0x1c49   :  { %2534 = vmatprep.subr.mxu0 %v2878_v0 }
0x1c4a   :  { %2535 = vmatpush3.msra.mxu0 %v2057_v57 }
0x1c4b   :  { %2536 = vmatprep.subr.mxu0 %v2878_v0 }
0x1c4c   :  { %2537 = vmatpush3.msra.mxu0 %v2056_v62 }
0x1c4d   :  { %2538 = vmatprep.subr.mxu0 %v2878_v0 }
0x1c4e   :  { %2539 = vmatpush3.msra.mxu0 %v2055_v63 }
0x1c4f   :  { %2541 = vmatmul.mubr.msk.f32.vlgmr.msra.gmra.mxu0 %vm1789_vm14, %v2070_v1 }
0x1cff   :  { %v2051_v2 = vpop.f32.mrf.mxu0 }
0x1d00   :  { %v2052_v10 = vadd.f32 %v2198_v61, %v2051_v2 }
0x1d01   :  { %v2523_v3 = vpop.f32.mrf.mxu0 }
0x1d0f   :  { %v2139_v4 = vpop.f32.mrf.mxu0 }
0x1d10   :  { %v2140_v9 = vadd.f32 %v2200_v8, %v2139_v4 }
0x1d11   :  { %v2542_v60 = vpop.f32.mrf.mxu0 }
0x1d12   :  { %2144 = vrot.lane.b32.xlu0 %v2140_v9, %s2884_s1 }
0x1d84   :  { %v2145_v11 = vpop.permute.xlu0 %2144 }
0x1d85   :  { %v2148_v5 = vsel %vm2147_vm15, %v2052_v10, %v2145_v11 }
0x1d86   :  { %2150 = vst.msk [vmem:[%s3430_s12] sm:$0x3] %vm2149_vm0, %v2148_v5 }
0x1d87   :  { %2155 = vsyncpa [#allocation3], 1 }
0x1d88   :  { %2156 = vsyncpa [#allocation5], 1 }
0x1d89   :  { %2157 = vsyncpa [#allocation8], 1 }
0x1d8a   :  { %2158 = vsyncpa [#allocation11], 1 }
0x1d8b   :  { %2159 = vsyncpa [#allocation14], 1 }

</bundles_post_ra>
